<compile_context>
chip_gen: v7x
topology: tpu7x:2x2x1
jax: 0.10.0
libtpu: 0.0.40
codegen_flags: <defaults>
</compile_context>

<pallas_src>
import functools
import math

import jax
import jax.numpy as jnp
from jax.experimental import pallas as pl
from jax.experimental.pallas import tpu as pltpu


# ------------------------------ helpers -------------------------------------

def _round_up(x, m):
    return (x + m - 1) // m * m


def _pick_block(b, max_block=256, min_steps=2):
    """Pick a batch tile (multiple of 8) and the padded batch size.

    Takes the largest tile up to `max_block` (fills the MXU M dimension and
    minimises the ~0.35us/step grid overhead on single-TC v5e/v6e).  Only
    splits further when there is enough work for >= `min_steps` 'parallel'
    steps, so v7x's two TensorCores both get a share (harmless elsewhere).
    """
    b8 = _round_up(b, 8)
    tb = min(max_block, b8)
    if b8 // tb < min_steps and b8 >= min_steps * 8:
        tb = _round_up(-(-b8 // min_steps), 8)      # cdiv, rounded up to 8
    return tb, _round_up(b, tb)


def _fuse_qkv(wq, bq, wk, bk, wv, bv, n_head):
    """Fuse Wq/Wk/Wv into a (D, 3D) weight with 1/sqrt(hd) folded into Q."""
    d = wq.shape[0]
    scale = 1.0 / math.sqrt(d // n_head)
    wqkv = jnp.concatenate([wq * scale, wk, wv], axis=1)
    bqkv = jnp.concatenate([bq * scale, bk, bv], axis=1)
    return wqkv, bqkv


# ----------------------------- Pallas kernels --------------------------------

def _attention_mean(qkv, bias_cols, wo, bo, *, n_head):
    """Masked MHA followed by a mean over the sequence axis.

    qkv      : list of L arrays, each (TB, 3*D) f32 (1/sqrt(hd) folded into Q).
    bias_cols: list of L (TB, 1) additive key-bias columns (0 / -1e30), or None.
    wo       : (D, D) bf16 output projection, bo: (1, D) f32.
    Returns (TB, D) f32 == mean_over_positions(MHA(x)).

    Per-key scores stay as (TB, 1) columns: running max + running sum, then
    ctx accumulates p_ki * v_ki directly -- no lane concats / extracts, so the
    only XLU work is the per-pair cross-lane reduce.  Softmax normalisation
    uses the EUP via pl.reciprocal(approx=True); batch stays on sublanes and
    the MXU is used only for the output projection.
    """
    L = len(qkv)
    TB = qkv[0].shape[0]
    D = wo.shape[0]
    hd = D // n_head
    inv_L = 1.0 / L

    acc = jnp.zeros((TB, D), jnp.float32)
    for h in range(n_head):
        q = [qkv[l][:, h * hd:(h + 1) * hd] for l in range(L)]
        k = [qkv[l][:, D + h * hd:D + (h + 1) * hd] for l in range(L)]
        v = [qkv[l][:, 2 * D + h * hd:2 * D + (h + 1) * hd] for l in range(L)]

        # mean over query positions commutes with the value matmul and the
        # output projection, so average the attention weights per key first.
        p_bar = [jnp.zeros((TB, 1), jnp.float32) for _ in range(L)]
        for qi in range(L):
            s = []
            for ki in range(L):
                s_ki = jnp.sum(q[qi] * k[ki], axis=-1, keepdims=True)  # (TB,1)
                if bias_cols is not None:
                    s_ki = s_ki + bias_cols[ki]
                s.append(s_ki)
            m = s[0]
            for ki in range(1, L):
                m = jnp.maximum(m, s[ki])
            p = [jnp.exp(s_ki - m) for s_ki in s]
            denom = p[0]
            for ki in range(1, L):
                denom = denom + p[ki]
            # fold the 1/L of the mean over query positions into the softmax
            # normalisation (one EUP reciprocal + one (TB,1) mul per query).
            inv = pl.reciprocal(denom, approx=True) * inv_L
            for ki in range(L):
                p_bar[ki] = p_bar[ki] + p[ki] * inv

        ctx = jnp.zeros((TB, hd), jnp.float32)
        for ki in range(L):
            ctx = ctx + p_bar[ki] * v[ki]
        # accumulate head output directly into the 128-lane result (no concat)
        acc = acc + jnp.dot(ctx.astype(jnp.bfloat16),
                            wo[h * hd:(h + 1) * hd, :],
                            preferred_element_type=jnp.float32)
    return acc + bo


def _seq_mha_kernel(x_ref, bias_ref, wqkv_ref, bqkv_ref, wo_ref, bo_ref,
                    o_ref, *, n_head):
    """Walk-sequence MHA + mean over positions for TB walks per grid step.

    x_ref: (L, TB, D) bf16 fused activation slab; one K=D QKV matmul per
    position (f32 accumulation).  bias_ref: (L, TB, 1) additive key mask.
    """
    L = x_ref.shape[0]
    w_qkv = wqkv_ref[...]                     # (D, 3D) bf16
    b_qkv = bqkv_ref[...]                     # (1, 3D) f32
    wo = wo_ref[...]                          # (D, D)  bf16
    bo = bo_ref[...]                          # (1, D)  f32

    # TODO(synk): per review this could be stored bf16 on v6e/v7x to halve the
    # live intermediate bytes; kept f32 so the score math is exact on v5e too.
    qkv = [jnp.dot(x_ref[l], w_qkv, preferred_element_type=jnp.float32) + b_qkv
           for l in range(L)]                 # L x (TB, 3D) f32
    bias_cols = [bias_ref[l] for l in range(L)]   # L x (TB, 1) f32, no shuffles

    out = _attention_mean(qkv, bias_cols, wo, bo, n_head=n_head)
    o_ref[...] = out.astype(o_ref.dtype)


def _agg_mha_kernel(x_ref, wqkv_ref, bqkv_ref, wo_ref, bo_ref, o_ref, *, n_head):
    """Walk-aggregation MHA (no key mask) + mean over walks, TB rows/step."""
    L = x_ref.shape[0]
    w_qkv = wqkv_ref[...]
    b_qkv = bqkv_ref[...]
    wo = wo_ref[...]
    bo = bo_ref[...]
    qkv = [jnp.dot(x_ref[l], w_qkv, preferred_element_type=jnp.float32) + b_qkv
           for l in range(L)]
    out = _attention_mean(qkv, None, wo, bo, n_head=n_head)
    o_ref[...] = out.astype(o_ref.dtype)


def _tail_kernel(agg_ref, lef_ref, ow_ref, ob_ref, w1a_ref, w1b_ref, b1_ref,
                 w2_ref, b2_ref, o_ref):
    """Fused out_fn(relu(agg)) + MergeLayer, bf16 matmuls / f32 accumulate.

    Emits one lane-dense (TB, 2*nfeat) slab: [ left | right ].
    """
    nfeat = ow_ref.shape[1]
    a = jnp.maximum(agg_ref[...], 0.0).astype(jnp.bfloat16)
    left = jnp.dot(a, ow_ref[...], preferred_element_type=jnp.float32) + ob_ref[...]
    # split fc1 to avoid an in-kernel lane concat of [left | last_event_feat]
    h = (jnp.dot(left.astype(jnp.bfloat16), w1a_ref[...],
                 preferred_element_type=jnp.float32)
         + jnp.dot(lef_ref[...], w1b_ref[...],
                   preferred_element_type=jnp.float32)
         + b1_ref[...])
    h = jnp.maximum(h, 0.0).astype(jnp.bfloat16)
    right = jnp.dot(h, w2_ref[...], preferred_element_type=jnp.float32) + b2_ref[...]
    o_ref[...] = jnp.concatenate([left, right], axis=-1).astype(o_ref.dtype)


# --------------------------- pallas_call wrappers ----------------------------

_VMEM_LIMIT = 32 * 1024 * 1024   # comfortably inside v7x's 64 MiB physical VMEM


def _maybe_buffered(block_shape, index_map, n_steps, depth=3):
    """Deeper input pipelining for streamed slabs when the grid is long enough
    (hides slab DMA on v5e's lower HBM bandwidth); default buffering otherwise."""
    if n_steps >= depth:
        return pl.BlockSpec(block_shape, index_map, pipeline_mode=pl.Buffered(depth))
    return pl.BlockSpec(block_shape, index_map)


def pallas_seq_mha(full_vals, bias, wqkv, bqkv, wo, bo, *, n_head, max_block=256):
    """full_vals: (L, BW, D) seq-major fused slab; bias: (L, BW, 1) additive."""
    L, B, D = full_vals.shape
    TB, Bp = _pick_block(B, max_block)
    pad = Bp - B
    if pad:
        full_vals = jnp.pad(full_vals, ((0, 0), (0, pad), (0, 0)))
        bias = jnp.pad(bias, ((0, 0), (0, pad), (0, 0)))   # padded rows unmasked

    n_steps = Bp // TB
    bf = jnp.bfloat16
    full2 = lambda b: (0, 0)   # grid-invariant weights (small; default buffering)

    out = pl.pallas_call(
        functools.partial(_seq_mha_kernel, n_head=n_head),
        out_shape=jax.ShapeDtypeStruct((Bp, D), jnp.float32),
        grid=(n_steps,),
        in_specs=[
            _maybe_buffered((L, TB, D), lambda b: (0, b, 0), n_steps),
            pl.BlockSpec((L, TB, 1), lambda b: (0, b, 0)),
            pl.BlockSpec(wqkv.shape, full2),
            pl.BlockSpec(bqkv.shape, full2),
            pl.BlockSpec(wo.shape, full2),
            pl.BlockSpec(bo.shape, full2),
        ],
        out_specs=pl.BlockSpec((TB, D), lambda b: (b, 0)),
        compiler_params=pltpu.CompilerParams(
            dimension_semantics=("parallel",),
            vmem_limit_bytes=_VMEM_LIMIT),
    )(full_vals.astype(bf), bias.astype(jnp.float32),
      wqkv.astype(bf), bqkv.astype(jnp.float32),
      wo.astype(bf), bo.astype(jnp.float32))
    return out[:B]


def pallas_agg_mha(x, wqkv, bqkv, wo, bo, *, n_head, max_block=256):
    """x: (n_walks, bs, D) seq-major walk representations."""
    L, B, D = x.shape
    TB, Bp = _pick_block(B, max_block)
    pad = Bp - B
    if pad:
        x = jnp.pad(x, ((0, 0), (0, pad), (0, 0)))
    n_steps = Bp // TB
    bf = jnp.bfloat16
    full2 = lambda b: (0, 0)
    out = pl.pallas_call(
        functools.partial(_agg_mha_kernel, n_head=n_head),
        out_shape=jax.ShapeDtypeStruct((Bp, D), jnp.float32),
        grid=(n_steps,),
        in_specs=[
            _maybe_buffered((L, TB, D), lambda b: (0, b, 0), n_steps),
            pl.BlockSpec(wqkv.shape, full2),
            pl.BlockSpec(bqkv.shape, full2),
            pl.BlockSpec(wo.shape, full2),
            pl.BlockSpec(bo.shape, full2),
        ],
        out_specs=pl.BlockSpec((TB, D), lambda b: (b, 0)),
        compiler_params=pltpu.CompilerParams(
            dimension_semantics=("parallel",),
            vmem_limit_bytes=_VMEM_LIMIT),
    )(x.astype(bf), wqkv.astype(bf), bqkv.astype(jnp.float32),
      wo.astype(bf), bo.astype(jnp.float32))
    return out[:B]


def pallas_tail(agg, last_event_feat, out_w, out_b, mg_w1, mg_b1, mg_w2, mg_b2,
                *, max_block=256):
    """Fused out_fn(relu(.)) + MergeLayer, row-tiled over the batch."""
    B, D = agg.shape
    nfeat = out_w.shape[1]
    d_lef = last_event_feat.shape[1]
    TB, Bp = _pick_block(B, max_block)
    pad = Bp - B
    if pad:
        agg = jnp.pad(agg, ((0, pad), (0, 0)))
        last_event_feat = jnp.pad(last_event_feat, ((0, pad), (0, 0)))
    w1a = mg_w1[:nfeat, :]
    w1b = mg_w1[nfeat:, :]
    bf = jnp.bfloat16
    full2 = lambda b: (0, 0)
    out = pl.pallas_call(
        _tail_kernel,
        out_shape=jax.ShapeDtypeStruct((Bp, 2 * nfeat), jnp.float32),
        grid=(Bp // TB,),
        in_specs=[
            pl.BlockSpec((TB, D), lambda b: (b, 0)),
            pl.BlockSpec((TB, d_lef), lambda b: (b, 0)),
            pl.BlockSpec(out_w.shape, full2),
            pl.BlockSpec(out_b.shape, full2),
            pl.BlockSpec(w1a.shape, full2),
            pl.BlockSpec(w1b.shape, full2),
            pl.BlockSpec(mg_b1.shape, full2),
            pl.BlockSpec(mg_w2.shape, full2),
            pl.BlockSpec(mg_b2.shape, full2),
        ],
        out_specs=pl.BlockSpec((TB, 2 * nfeat), lambda b: (b, 0)),
        compiler_params=pltpu.CompilerParams(
            dimension_semantics=("parallel",),
            vmem_limit_bytes=_VMEM_LIMIT),
    )(agg, last_event_feat.astype(bf),
      out_w.astype(bf), out_b.astype(jnp.float32),
      w1a.astype(bf), w1b.astype(bf), mg_b1.astype(jnp.float32),
      mg_w2.astype(bf), mg_b2.astype(jnp.float32))
    return out[:B, :nfeat], out[:B, nfeat:]


# ------------------------ shared XLA-level glue ------------------------------
# Embedding gathers, the tiny K=5 anonymization MLP, the time cos-encoding and
# the last-event concat stay in plain XLA (per perf review).

def _anony_mlp(x2d, params):
    h = jnp.maximum(x2d @ params['an_w1'] + params['an_b1'], 0.0)
    return h @ params['an_w2'] + params['an_b2']


def _precompute(params, inputs):
    (prev_srcs, prev_dsts, prev_srcs_codes, prev_dsts_codes, prev_eids,
     walk_nids, walk_anonymized_codes, walk_eids, walk_ts) = inputs
    bs, n_walks, L = walk_nids.shape
    nfeat = params['node_table'].shape[1]
    BW = bs * n_walks

    prev_ts = walk_ts[:, 0, -1]

    # Build everything directly in seq-major, walk-major layout (L, BW, ...)
    # with flat index j = iw * bs + ib, so no activation transpose has to
    # round-trip through HBM before the Pallas calls.
    wn_T = walk_nids.transpose(2, 1, 0).reshape(L, BW)
    we_T = walk_eids.transpose(2, 1, 0).reshape(L, BW)
    wt_T = walk_ts.transpose(2, 1, 0).reshape(L, BW)
    wa_T = walk_anonymized_codes.transpose(2, 1, 0, 3).reshape(L, BW, L)

    node_vals = params['node_table'][wn_T]                     # (L, BW, nfeat)
    edge_vals = params['edge_table'][we_T]                     # (L, BW, efeat)
    anony_vals = _anony_mlp(wa_T.reshape(L * BW, L), params).reshape(L, BW, nfeat)
    dt = wt_T[-1:, :] - wt_T                                   # (L, BW)
    ts_vals = jnp.cos(dt[..., None] * params['time_w'] + params['time_b'])

    # ONE fused activation slab (L, BW, D): single K=D QKV matmul in-kernel.
    full_vals = jnp.concatenate([node_vals, edge_vals, anony_vals, ts_vals],
                                axis=-1)                       # (L, BW, D)

    mask = (wn_T == 0).at[-1, :].set(False)                    # last key valid
    bias = jnp.where(mask, -1e30, 0.0).astype(jnp.float32)[..., None]  # (L,BW,1)

    # last-event features (tiny, plain XLA)
    nfeats = params['node_table'][jnp.stack([prev_srcs, prev_dsts], axis=1)]
    nfeats = nfeats.reshape(bs, 2 * nfeat)
    efeats = params['edge_table'][prev_eids]
    codes = jnp.stack([prev_srcs_codes, prev_dsts_codes], axis=1).reshape(bs * 2, L)
    anony_codes = _anony_mlp(codes, params).reshape(bs, 2 * nfeat)
    last_event_feat = jnp.concatenate([nfeats, efeats, anony_codes], axis=1)

    invalid = (prev_srcs == 0)[:, None]
    return dict(full=full_vals, bias=bias, last_event_feat=last_event_feat,
                invalid=invalid, prev_ts=prev_ts, bs=bs, n_walks=n_walks)


# ------------------------------- forwards ------------------------------------

def forward_pallas(params, inputs):
    pre = _precompute(params, inputs)
    n_head = params['n_head']
    bs, n_walks = pre['bs'], pre['n_walks']

    wq, bq, wk, bk, wv, bv, wo, bo = params['seq_mha']
    wqkv, bqkv = _fuse_qkv(wq, bq, wk, bk, wv, bv, n_head)
    walk = pallas_seq_mha(pre['full'], pre['bias'], wqkv, bqkv, wo, bo,
                          n_head=n_head)                        # (BW, D)
    D = wo.shape[0]
    walk = walk.reshape(n_walks, bs, D)        # already seq-major for agg MHA

    wq2, bq2, wk2, bk2, wv2, bv2, wo2, bo2 = params['agg_mha']
    wqkv2, bqkv2 = _fuse_qkv(wq2, bq2, wk2, bk2, wv2, bv2, n_head)
    agg = pallas_agg_mha(walk, wqkv2, bqkv2, wo2, bo2, n_head=n_head)   # (bs, D)

    left, right = pallas_tail(agg, pre['last_event_feat'],
                              params['out_w'], params['out_b'],
                              params['mg_w1'], params['mg_b1'],
                              params['mg_w2'], params['mg_b2'])

    left = jnp.where(pre['invalid'], 0.0, left)
    right = jnp.where(pre['invalid'], 0.0, right)
    return left, right, pre['prev_ts']


def ref_mha(x, bias, wq, bq, wk, bk, wv, bv, wo, bo, *, n_head):
    B, L, D = x.shape
    hd = D // n_head
    q = (x @ wq + bq).reshape(B, L, n_head, hd)
    k = (x @ wk + bk).reshape(B, L, n_head, hd)
    v = (x @ wv + bv).reshape(B, L, n_head, hd)
    s = jnp.einsum('bqhd,bkhd->bhqk', q, k) / math.sqrt(hd)
    s = s + bias[:, None, :, :]
    p = jax.nn.softmax(s, axis=-1)
    o = jnp.einsum('bhqk,bkhd->bqhd', p, v).reshape(B, L, D)
    return o @ wo + bo


def forward_reference(params, inputs):
    pre = _precompute(params, inputs)
    n_head = params['n_head']
    bs, n_walks = pre['bs'], pre['n_walks']

    x = jnp.transpose(pre['full'], (1, 0, 2))            # (BW, L, D) batch-major
    bias3 = jnp.transpose(pre['bias'][:, :, 0], (1, 0))[:, None, :]   # (BW,1,L)
    walk = ref_mha(x, bias3, *params['seq_mha'], n_head=n_head).mean(axis=1)
    walk = walk.reshape(n_walks, bs, -1).transpose(1, 0, 2)   # (bs, n_walks, D)

    zero_bias = jnp.zeros((bs, 1, n_walks), jnp.float32)
    agg = ref_mha(walk, zero_bias, *params['agg_mha'], n_head=n_head).mean(axis=1)

    left = jnp.maximum(agg, 0.0) @ params['out_w'] + params['out_b']
    merged = jnp.concatenate([left, pre['last_event_feat']], axis=1)
    right = (jnp.maximum(merged @ params['mg_w1'] + params['mg_b1'], 0.0)
             @ params['mg_w2'] + params['mg_b2'])

    left = jnp.where(pre['invalid'], 0.0, left)
    right = jnp.where(pre['invalid'], 0.0, right)
    return left, right, pre['prev_ts']


# ------------------------------ parameters ----------------------------------

def init_params(key, *, n_nodes, n_edges, nfeat, efeat, walk_length, n_head):
    d_model = 2 * nfeat + efeat + nfeat          # node + anony + edge + time
    d_last_edge = 4 * nfeat + efeat
    ks = iter(jax.random.split(key, 32))

    def nrm(shape, scale=0.1):
        return (scale * jax.random.normal(next(ks), shape)).astype(jnp.float32)

    def mha_params(d):
        return (nrm((d, d)), nrm((1, d), 0.01),   # Wq, bq
                nrm((d, d)), nrm((1, d), 0.01),   # Wk, bk
                nrm((d, d)), nrm((1, d), 0.01),   # Wv, bv
                nrm((d, d)), nrm((1, d), 0.01))   # Wo, bo

    node_table = nrm((n_nodes, nfeat)).at[0].set(0.0)   # id 0 = padding
    edge_table = nrm((n_edges, efeat)).at[0].set(0.0)

    return dict(
        node_table=node_table,
        edge_table=edge_table,
        time_w=(1.0 / (10.0 ** jnp.linspace(0.0, 9.0, nfeat))).astype(jnp.float32),
        time_b=jnp.zeros((nfeat,), jnp.float32),
        an_w1=nrm((walk_length, nfeat)), an_b1=nrm((1, nfeat), 0.01),
        an_w2=nrm((nfeat, nfeat)),       an_b2=nrm((1, nfeat), 0.01),
        seq_mha=mha_params(d_model),
        agg_mha=mha_params(d_model),
        out_w=nrm((d_model, nfeat)), out_b=nrm((1, nfeat), 0.01),
        mg_w1=nrm((nfeat + d_last_edge, nfeat)), mg_b1=nrm((1, nfeat), 0.01),
        mg_w2=nrm((nfeat, nfeat)),               mg_b2=nrm((1, nfeat), 0.01),
        n_head=n_head,
    )


# --------------------------------- main --------------------------------------

if __name__ == "__main__":
    bs, n_walks, walk_length = 2, 4, 5
    nfeat = efeat = 32
    n_nodes, n_edges = 16, 32
    n_head = 2

    key = jax.random.PRNGKey(0)
    pkey, dkey = jax.random.split(key)
    params = init_params(pkey, n_nodes=n_nodes, n_edges=n_edges, nfeat=nfeat,
                         efeat=efeat, walk_length=walk_length, n_head=n_head)

    ks = jax.random.split(dkey, 9)
    walk_nids = jax.random.randint(ks[0], (bs, n_walks, walk_length), 0, n_nodes)
    walk_nids = walk_nids.at[0, 0, 0].set(0).at[1, 2, 1].set(0)   # padding entries
    walk_eids = jax.random.randint(ks[1], (bs, n_walks, walk_length), 0, n_edges)
    walk_ts = jnp.sort(jax.random.uniform(ks[2], (bs, n_walks, walk_length),
                                          minval=0.0, maxval=100.0), axis=-1)
    walk_anonymized_codes = jax.random.randint(
        ks[3], (bs, n_walks, walk_length, walk_length), 0, walk_length
    ).astype(jnp.float32)
    prev_srcs = jax.random.randint(ks[4], (bs,), 1, n_nodes).at[1].set(0)
    prev_dsts = jax.random.randint(ks[5], (bs,), 1, n_nodes)
    prev_eids = jax.random.randint(ks[6], (bs,), 1, n_edges)
    prev_srcs_codes = jax.random.randint(ks[7], (bs, walk_length), 0,
                                         walk_length).astype(jnp.float32)
    prev_dsts_codes = jax.random.randint(ks[8], (bs, walk_length), 0,
                                         walk_length).astype(jnp.float32)

    inputs = (prev_srcs, prev_dsts, prev_srcs_codes, prev_dsts_codes, prev_eids,
              walk_nids, walk_anonymized_codes, walk_eids, walk_ts)

    out_pl = jax.block_until_ready(forward_pallas(params, inputs))
    out_ref = jax.block_until_ready(forward_reference(params, inputs))

    # bf16 operands + approx reciprocal perturb the result slightly; 5e-2 is
    # comfortable for these magnitudes.
    for a, b in zip(out_pl, out_ref):
        err = float(jnp.max(jnp.abs(a.astype(jnp.float32) - b.astype(jnp.float32))))
        assert jnp.allclose(a, b, rtol=5e-2, atol=5e-2), f"max abs err {err}"

    print("KERNEL_OK")
</pallas_src>

<mosaic_0001>
module attributes {stable_mosaic.version = 11 : i64} {
  func.func @_seq_mha_kernel(%arg0: i32, %arg1: memref<5x8x128xbf16, #tpu.memory_space<vmem>>, %arg2: memref<5x8x1xf32, #tpu.memory_space<vmem>>, %arg3: memref<128x384xbf16, #tpu.memory_space<vmem>>, %arg4: memref<1x384xf32, #tpu.memory_space<vmem>>, %arg5: memref<128x128xbf16, #tpu.memory_space<vmem>>, %arg6: memref<1x128xf32, #tpu.memory_space<vmem>>, %arg7: memref<8x128xf32, #tpu.memory_space<vmem>>) attributes {dimension_semantics = [#tpu.dimension_semantics<parallel>], iteration_bounds = array<i64: 1>, scalar_prefetch = 0 : i64, scratch_operands = 0 : i64, tpu.core_type = #tpu.core_type<tc>, window_params = [{transform_indices = @transform_0, window_bounds = array<i64: 5, 8, 128>}, {transform_indices = @transform_1, window_bounds = array<i64: 5, 8, 1>}, {pipeline_mode = #tpu.pipeline_mode<synchronous>, transform_indices = @transform_2, window_bounds = array<i64: 128, 384>}, {pipeline_mode = #tpu.pipeline_mode<synchronous>, transform_indices = @transform_3, window_bounds = array<i64: 1, 384>}, {pipeline_mode = #tpu.pipeline_mode<synchronous>, transform_indices = @transform_4, window_bounds = array<i64: 128, 128>}, {pipeline_mode = #tpu.pipeline_mode<synchronous>, transform_indices = @transform_5, window_bounds = array<i64: 1, 128>}, {transform_indices = @transform_6, window_bounds = array<i64: 8, 128>}]} {
    %c0 = arith.constant 0 : index
    %c0_0 = arith.constant 0 : index
    %0 = vector.load %arg3[%c0, %c0_0] : memref<128x384xbf16, #tpu.memory_space<vmem>>, vector<128x384xbf16>
    %c0_1 = arith.constant 0 : index
    %c0_2 = arith.constant 0 : index
    %1 = vector.load %arg4[%c0_1, %c0_2] : memref<1x384xf32, #tpu.memory_space<vmem>>, vector<1x384xf32>
    %c0_3 = arith.constant 0 : index
    %c0_4 = arith.constant 0 : index
    %2 = vector.load %arg5[%c0_3, %c0_4] : memref<128x128xbf16, #tpu.memory_space<vmem>>, vector<128x128xbf16>
    %c0_5 = arith.constant 0 : index
    %c0_6 = arith.constant 0 : index
    %3 = vector.load %arg6[%c0_5, %c0_6] : memref<1x128xf32, #tpu.memory_space<vmem>>, vector<1x128xf32>
    %c0_7 = arith.constant 0 : index
    %c0_8 = arith.constant 0 : index
    %c0_9 = arith.constant 0 : index
    %4 = vector.load %arg1[%c0_7, %c0_8, %c0_9] : memref<5x8x128xbf16, #tpu.memory_space<vmem>>, vector<1x8x128xbf16>
    %5 = vector.shape_cast %4 : vector<1x8x128xbf16> to vector<8x128xbf16>
    %cst = arith.constant dense<0.000000e+00> : vector<8x384xf32>
    %6 = tpu.matmul %5, %0, %cst {dimension_numbers = #tpu.dot_dimension_numbers<[1], [0], [0], [1], [0, 0, 1, 1], [], []>} : vector<8x128xbf16>, vector<128x384xbf16>, vector<8x384xf32> -> vector<8x384xf32>
    %7 = vector.broadcast %1 : vector<1x384xf32> to vector<8x384xf32>
    %8 = arith.addf %6, %7 : vector<8x384xf32>
    %c1 = arith.constant 1 : index
    %c0_10 = arith.constant 0 : index
    %c0_11 = arith.constant 0 : index
    %9 = vector.load %arg1[%c1, %c0_10, %c0_11] : memref<5x8x128xbf16, #tpu.memory_space<vmem>>, vector<1x8x128xbf16>
    %10 = vector.shape_cast %9 : vector<1x8x128xbf16> to vector<8x128xbf16>
    %cst_12 = arith.constant dense<0.000000e+00> : vector<8x384xf32>
    %11 = tpu.matmul %10, %0, %cst_12 {dimension_numbers = #tpu.dot_dimension_numbers<[1], [0], [0], [1], [0, 0, 1, 1], [], []>} : vector<8x128xbf16>, vector<128x384xbf16>, vector<8x384xf32> -> vector<8x384xf32>
    %12 = vector.broadcast %1 : vector<1x384xf32> to vector<8x384xf32>
    %13 = arith.addf %11, %12 : vector<8x384xf32>
    %c2 = arith.constant 2 : index
    %c0_13 = arith.constant 0 : index
    %c0_14 = arith.constant 0 : index
    %14 = vector.load %arg1[%c2, %c0_13, %c0_14] : memref<5x8x128xbf16, #tpu.memory_space<vmem>>, vector<1x8x128xbf16>
    %15 = vector.shape_cast %14 : vector<1x8x128xbf16> to vector<8x128xbf16>
    %cst_15 = arith.constant dense<0.000000e+00> : vector<8x384xf32>
    %16 = tpu.matmul %15, %0, %cst_15 {dimension_numbers = #tpu.dot_dimension_numbers<[1], [0], [0], [1], [0, 0, 1, 1], [], []>} : vector<8x128xbf16>, vector<128x384xbf16>, vector<8x384xf32> -> vector<8x384xf32>
    %17 = vector.broadcast %1 : vector<1x384xf32> to vector<8x384xf32>
    %18 = arith.addf %16, %17 : vector<8x384xf32>
    %c3 = arith.constant 3 : index
    %c0_16 = arith.constant 0 : index
    %c0_17 = arith.constant 0 : index
    %19 = vector.load %arg1[%c3, %c0_16, %c0_17] : memref<5x8x128xbf16, #tpu.memory_space<vmem>>, vector<1x8x128xbf16>
    %20 = vector.shape_cast %19 : vector<1x8x128xbf16> to vector<8x128xbf16>
    %cst_18 = arith.constant dense<0.000000e+00> : vector<8x384xf32>
    %21 = tpu.matmul %20, %0, %cst_18 {dimension_numbers = #tpu.dot_dimension_numbers<[1], [0], [0], [1], [0, 0, 1, 1], [], []>} : vector<8x128xbf16>, vector<128x384xbf16>, vector<8x384xf32> -> vector<8x384xf32>
    %22 = vector.broadcast %1 : vector<1x384xf32> to vector<8x384xf32>
    %23 = arith.addf %21, %22 : vector<8x384xf32>
    %c4 = arith.constant 4 : index
    %c0_19 = arith.constant 0 : index
    %c0_20 = arith.constant 0 : index
    %24 = vector.load %arg1[%c4, %c0_19, %c0_20] : memref<5x8x128xbf16, #tpu.memory_space<vmem>>, vector<1x8x128xbf16>
    %25 = vector.shape_cast %24 : vector<1x8x128xbf16> to vector<8x128xbf16>
    %cst_21 = arith.constant dense<0.000000e+00> : vector<8x384xf32>
    %26 = tpu.matmul %25, %0, %cst_21 {dimension_numbers = #tpu.dot_dimension_numbers<[1], [0], [0], [1], [0, 0, 1, 1], [], []>} : vector<8x128xbf16>, vector<128x384xbf16>, vector<8x384xf32> -> vector<8x384xf32>
    %27 = vector.broadcast %1 : vector<1x384xf32> to vector<8x384xf32>
    %28 = arith.addf %26, %27 : vector<8x384xf32>
    %c0_22 = arith.constant 0 : index
    %c0_23 = arith.constant 0 : index
    %c0_24 = arith.constant 0 : index
    %29 = vector.load %arg2[%c0_22, %c0_23, %c0_24] : memref<5x8x1xf32, #tpu.memory_space<vmem>>, vector<1x8x1xf32>
    %30 = vector.shape_cast %29 : vector<1x8x1xf32> to vector<8x1xf32>
    %c1_25 = arith.constant 1 : index
    %c0_26 = arith.constant 0 : index
    %c0_27 = arith.constant 0 : index
    %31 = vector.load %arg2[%c1_25, %c0_26, %c0_27] : memref<5x8x1xf32, #tpu.memory_space<vmem>>, vector<1x8x1xf32>
    %32 = vector.shape_cast %31 : vector<1x8x1xf32> to vector<8x1xf32>
    %c2_28 = arith.constant 2 : index
    %c0_29 = arith.constant 0 : index
    %c0_30 = arith.constant 0 : index
    %33 = vector.load %arg2[%c2_28, %c0_29, %c0_30] : memref<5x8x1xf32, #tpu.memory_space<vmem>>, vector<1x8x1xf32>
    %34 = vector.shape_cast %33 : vector<1x8x1xf32> to vector<8x1xf32>
    %c3_31 = arith.constant 3 : index
    %c0_32 = arith.constant 0 : index
    %c0_33 = arith.constant 0 : index
    %35 = vector.load %arg2[%c3_31, %c0_32, %c0_33] : memref<5x8x1xf32, #tpu.memory_space<vmem>>, vector<1x8x1xf32>
    %36 = vector.shape_cast %35 : vector<1x8x1xf32> to vector<8x1xf32>
    %c4_34 = arith.constant 4 : index
    %c0_35 = arith.constant 0 : index
    %c0_36 = arith.constant 0 : index
    %37 = vector.load %arg2[%c4_34, %c0_35, %c0_36] : memref<5x8x1xf32, #tpu.memory_space<vmem>>, vector<1x8x1xf32>
    %38 = vector.shape_cast %37 : vector<1x8x1xf32> to vector<8x1xf32>
    %cst_37 = arith.constant 0.000000e+00 : f32
    %39 = vector.broadcast %cst_37 : f32 to vector<8x128xf32>
    %40 = vector.extract_strided_slice %8 {offsets = [0, 0], sizes = [8, 64], strides = [1, 1]} : vector<8x384xf32> to vector<8x64xf32>
    %41 = vector.extract_strided_slice %13 {offsets = [0, 0], sizes = [8, 64], strides = [1, 1]} : vector<8x384xf32> to vector<8x64xf32>
    %42 = vector.extract_strided_slice %18 {offsets = [0, 0], sizes = [8, 64], strides = [1, 1]} : vector<8x384xf32> to vector<8x64xf32>
    %43 = vector.extract_strided_slice %23 {offsets = [0, 0], sizes = [8, 64], strides = [1, 1]} : vector<8x384xf32> to vector<8x64xf32>
    %44 = vector.extract_strided_slice %28 {offsets = [0, 0], sizes = [8, 64], strides = [1, 1]} : vector<8x384xf32> to vector<8x64xf32>
    %45 = vector.extract_strided_slice %8 {offsets = [0, 128], sizes = [8, 64], strides = [1, 1]} : vector<8x384xf32> to vector<8x64xf32>
    %46 = vector.extract_strided_slice %13 {offsets = [0, 128], sizes = [8, 64], strides = [1, 1]} : vector<8x384xf32> to vector<8x64xf32>
    %47 = vector.extract_strided_slice %18 {offsets = [0, 128], sizes = [8, 64], strides = [1, 1]} : vector<8x384xf32> to vector<8x64xf32>
    %48 = vector.extract_strided_slice %23 {offsets = [0, 128], sizes = [8, 64], strides = [1, 1]} : vector<8x384xf32> to vector<8x64xf32>
    %49 = vector.extract_strided_slice %28 {offsets = [0, 128], sizes = [8, 64], strides = [1, 1]} : vector<8x384xf32> to vector<8x64xf32>
    %50 = vector.extract_strided_slice %8 {offsets = [0, 256], sizes = [8, 64], strides = [1, 1]} : vector<8x384xf32> to vector<8x64xf32>
    %51 = vector.extract_strided_slice %13 {offsets = [0, 256], sizes = [8, 64], strides = [1, 1]} : vector<8x384xf32> to vector<8x64xf32>
    %52 = vector.extract_strided_slice %18 {offsets = [0, 256], sizes = [8, 64], strides = [1, 1]} : vector<8x384xf32> to vector<8x64xf32>
    %53 = vector.extract_strided_slice %23 {offsets = [0, 256], sizes = [8, 64], strides = [1, 1]} : vector<8x384xf32> to vector<8x64xf32>
    %54 = vector.extract_strided_slice %28 {offsets = [0, 256], sizes = [8, 64], strides = [1, 1]} : vector<8x384xf32> to vector<8x64xf32>
    %cst_38 = arith.constant 0.000000e+00 : f32
    %55 = vector.broadcast %cst_38 : f32 to vector<8x1xf32>
    %cst_39 = arith.constant 0.000000e+00 : f32
    %56 = vector.broadcast %cst_39 : f32 to vector<8x1xf32>
    %cst_40 = arith.constant 0.000000e+00 : f32
    %57 = vector.broadcast %cst_40 : f32 to vector<8x1xf32>
    %cst_41 = arith.constant 0.000000e+00 : f32
    %58 = vector.broadcast %cst_41 : f32 to vector<8x1xf32>
    %cst_42 = arith.constant 0.000000e+00 : f32
    %59 = vector.broadcast %cst_42 : f32 to vector<8x1xf32>
    %60 = arith.mulf %40, %45 : vector<8x64xf32>
    %cst_43 = arith.constant dense<0.000000e+00> : vector<8xf32>
    %61 = vector.multi_reduction <add>, %60, %cst_43 [1] : vector<8x64xf32> to vector<8xf32>
    %62 = vector.shape_cast %61 : vector<8xf32> to vector<8x1xf32>
    %63 = arith.addf %62, %30 : vector<8x1xf32>
    %64 = arith.mulf %40, %46 : vector<8x64xf32>
    %cst_44 = arith.constant dense<0.000000e+00> : vector<8xf32>
    %65 = vector.multi_reduction <add>, %64, %cst_44 [1] : vector<8x64xf32> to vector<8xf32>
    %66 = vector.shape_cast %65 : vector<8xf32> to vector<8x1xf32>
    %67 = arith.addf %66, %32 : vector<8x1xf32>
    %68 = arith.mulf %40, %47 : vector<8x64xf32>
    %cst_45 = arith.constant dense<0.000000e+00> : vector<8xf32>
    %69 = vector.multi_reduction <add>, %68, %cst_45 [1] : vector<8x64xf32> to vector<8xf32>
    %70 = vector.shape_cast %69 : vector<8xf32> to vector<8x1xf32>
    %71 = arith.addf %70, %34 : vector<8x1xf32>
    %72 = arith.mulf %40, %48 : vector<8x64xf32>
    %cst_46 = arith.constant dense<0.000000e+00> : vector<8xf32>
    %73 = vector.multi_reduction <add>, %72, %cst_46 [1] : vector<8x64xf32> to vector<8xf32>
    %74 = vector.shape_cast %73 : vector<8xf32> to vector<8x1xf32>
    %75 = arith.addf %74, %36 : vector<8x1xf32>
    %76 = arith.mulf %40, %49 : vector<8x64xf32>
    %cst_47 = arith.constant dense<0.000000e+00> : vector<8xf32>
    %77 = vector.multi_reduction <add>, %76, %cst_47 [1] : vector<8x64xf32> to vector<8xf32>
    %78 = vector.shape_cast %77 : vector<8xf32> to vector<8x1xf32>
    %79 = arith.addf %78, %38 : vector<8x1xf32>
    %80 = arith.maximumf %63, %67 : vector<8x1xf32>
    %81 = arith.maximumf %80, %71 : vector<8x1xf32>
    %82 = arith.maximumf %81, %75 : vector<8x1xf32>
    %83 = arith.maximumf %82, %79 : vector<8x1xf32>
    %84 = arith.subf %63, %83 : vector<8x1xf32>
    %85 = math.exp %84 : vector<8x1xf32>
    %86 = arith.subf %67, %83 : vector<8x1xf32>
    %87 = math.exp %86 : vector<8x1xf32>
    %88 = arith.subf %71, %83 : vector<8x1xf32>
    %89 = math.exp %88 : vector<8x1xf32>
    %90 = arith.subf %75, %83 : vector<8x1xf32>
    %91 = math.exp %90 : vector<8x1xf32>
    %92 = arith.subf %79, %83 : vector<8x1xf32>
    %93 = math.exp %92 : vector<8x1xf32>
    %94 = arith.addf %85, %87 : vector<8x1xf32>
    %95 = arith.addf %94, %89 : vector<8x1xf32>
    %96 = arith.addf %95, %91 : vector<8x1xf32>
    %97 = arith.addf %96, %93 : vector<8x1xf32>
    %98 = tpu.reciprocal %97 {approx = true} : vector<8x1xf32> -> vector<8x1xf32>
    %cst_48 = arith.constant 2.000000e-01 : f32
    %99 = vector.broadcast %cst_48 : f32 to vector<8x1xf32>
    %100 = arith.mulf %98, %99 : vector<8x1xf32>
    %101 = arith.mulf %85, %100 : vector<8x1xf32>
    %102 = arith.addf %55, %101 : vector<8x1xf32>
    %103 = arith.mulf %87, %100 : vector<8x1xf32>
    %104 = arith.addf %56, %103 : vector<8x1xf32>
    %105 = arith.mulf %89, %100 : vector<8x1xf32>
    %106 = arith.addf %57, %105 : vector<8x1xf32>
    %107 = arith.mulf %91, %100 : vector<8x1xf32>
    %108 = arith.addf %58, %107 : vector<8x1xf32>
    %109 = arith.mulf %93, %100 : vector<8x1xf32>
    %110 = arith.addf %59, %109 : vector<8x1xf32>
    %111 = arith.mulf %41, %45 : vector<8x64xf32>
    %cst_49 = arith.constant dense<0.000000e+00> : vector<8xf32>
    %112 = vector.multi_reduction <add>, %111, %cst_49 [1] : vector<8x64xf32> to vector<8xf32>
    %113 = vector.shape_cast %112 : vector<8xf32> to vector<8x1xf32>
    %114 = arith.addf %113, %30 : vector<8x1xf32>
    %115 = arith.mulf %41, %46 : vector<8x64xf32>
    %cst_50 = arith.constant dense<0.000000e+00> : vector<8xf32>
    %116 = vector.multi_reduction <add>, %115, %cst_50 [1] : vector<8x64xf32> to vector<8xf32>
    %117 = vector.shape_cast %116 : vector<8xf32> to vector<8x1xf32>
    %118 = arith.addf %117, %32 : vector<8x1xf32>
    %119 = arith.mulf %41, %47 : vector<8x64xf32>
    %cst_51 = arith.constant dense<0.000000e+00> : vector<8xf32>
    %120 = vector.multi_reduction <add>, %119, %cst_51 [1] : vector<8x64xf32> to vector<8xf32>
    %121 = vector.shape_cast %120 : vector<8xf32> to vector<8x1xf32>
    %122 = arith.addf %121, %34 : vector<8x1xf32>
    %123 = arith.mulf %41, %48 : vector<8x64xf32>
    %cst_52 = arith.constant dense<0.000000e+00> : vector<8xf32>
    %124 = vector.multi_reduction <add>, %123, %cst_52 [1] : vector<8x64xf32> to vector<8xf32>
    %125 = vector.shape_cast %124 : vector<8xf32> to vector<8x1xf32>
    %126 = arith.addf %125, %36 : vector<8x1xf32>
    %127 = arith.mulf %41, %49 : vector<8x64xf32>
    %cst_53 = arith.constant dense<0.000000e+00> : vector<8xf32>
    %128 = vector.multi_reduction <add>, %127, %cst_53 [1] : vector<8x64xf32> to vector<8xf32>
    %129 = vector.shape_cast %128 : vector<8xf32> to vector<8x1xf32>
    %130 = arith.addf %129, %38 : vector<8x1xf32>
    %131 = arith.maximumf %114, %118 : vector<8x1xf32>
    %132 = arith.maximumf %131, %122 : vector<8x1xf32>
    %133 = arith.maximumf %132, %126 : vector<8x1xf32>
    %134 = arith.maximumf %133, %130 : vector<8x1xf32>
    %135 = arith.subf %114, %134 : vector<8x1xf32>
    %136 = math.exp %135 : vector<8x1xf32>
    %137 = arith.subf %118, %134 : vector<8x1xf32>
    %138 = math.exp %137 : vector<8x1xf32>
    %139 = arith.subf %122, %134 : vector<8x1xf32>
    %140 = math.exp %139 : vector<8x1xf32>
    %141 = arith.subf %126, %134 : vector<8x1xf32>
    %142 = math.exp %141 : vector<8x1xf32>
    %143 = arith.subf %130, %134 : vector<8x1xf32>
    %144 = math.exp %143 : vector<8x1xf32>
    %145 = arith.addf %136, %138 : vector<8x1xf32>
    %146 = arith.addf %145, %140 : vector<8x1xf32>
    %147 = arith.addf %146, %142 : vector<8x1xf32>
    %148 = arith.addf %147, %144 : vector<8x1xf32>
    %149 = tpu.reciprocal %148 {approx = true} : vector<8x1xf32> -> vector<8x1xf32>
    %cst_54 = arith.constant 2.000000e-01 : f32
    %150 = vector.broadcast %cst_54 : f32 to vector<8x1xf32>
    %151 = arith.mulf %149, %150 : vector<8x1xf32>
    %152 = arith.mulf %136, %151 : vector<8x1xf32>
    %153 = arith.addf %102, %152 : vector<8x1xf32>
    %154 = arith.mulf %138, %151 : vector<8x1xf32>
    %155 = arith.addf %104, %154 : vector<8x1xf32>
    %156 = arith.mulf %140, %151 : vector<8x1xf32>
    %157 = arith.addf %106, %156 : vector<8x1xf32>
    %158 = arith.mulf %142, %151 : vector<8x1xf32>
    %159 = arith.addf %108, %158 : vector<8x1xf32>
    %160 = arith.mulf %144, %151 : vector<8x1xf32>
    %161 = arith.addf %110, %160 : vector<8x1xf32>
    %162 = arith.mulf %42, %45 : vector<8x64xf32>
    %cst_55 = arith.constant dense<0.000000e+00> : vector<8xf32>
    %163 = vector.multi_reduction <add>, %162, %cst_55 [1] : vector<8x64xf32> to vector<8xf32>
    %164 = vector.shape_cast %163 : vector<8xf32> to vector<8x1xf32>
    %165 = arith.addf %164, %30 : vector<8x1xf32>
    %166 = arith.mulf %42, %46 : vector<8x64xf32>
    %cst_56 = arith.constant dense<0.000000e+00> : vector<8xf32>
    %167 = vector.multi_reduction <add>, %166, %cst_56 [1] : vector<8x64xf32> to vector<8xf32>
    %168 = vector.shape_cast %167 : vector<8xf32> to vector<8x1xf32>
    %169 = arith.addf %168, %32 : vector<8x1xf32>
    %170 = arith.mulf %42, %47 : vector<8x64xf32>
    %cst_57 = arith.constant dense<0.000000e+00> : vector<8xf32>
    %171 = vector.multi_reduction <add>, %170, %cst_57 [1] : vector<8x64xf32> to vector<8xf32>
    %172 = vector.shape_cast %171 : vector<8xf32> to vector<8x1xf32>
    %173 = arith.addf %172, %34 : vector<8x1xf32>
    %174 = arith.mulf %42, %48 : vector<8x64xf32>
    %cst_58 = arith.constant dense<0.000000e+00> : vector<8xf32>
    %175 = vector.multi_reduction <add>, %174, %cst_58 [1] : vector<8x64xf32> to vector<8xf32>
    %176 = vector.shape_cast %175 : vector<8xf32> to vector<8x1xf32>
    %177 = arith.addf %176, %36 : vector<8x1xf32>
    %178 = arith.mulf %42, %49 : vector<8x64xf32>
    %cst_59 = arith.constant dense<0.000000e+00> : vector<8xf32>
    %179 = vector.multi_reduction <add>, %178, %cst_59 [1] : vector<8x64xf32> to vector<8xf32>
    %180 = vector.shape_cast %179 : vector<8xf32> to vector<8x1xf32>
    %181 = arith.addf %180, %38 : vector<8x1xf32>
    %182 = arith.maximumf %165, %169 : vector<8x1xf32>
    %183 = arith.maximumf %182, %173 : vector<8x1xf32>
    %184 = arith.maximumf %183, %177 : vector<8x1xf32>
    %185 = arith.maximumf %184, %181 : vector<8x1xf32>
    %186 = arith.subf %165, %185 : vector<8x1xf32>
    %187 = math.exp %186 : vector<8x1xf32>
    %188 = arith.subf %169, %185 : vector<8x1xf32>
    %189 = math.exp %188 : vector<8x1xf32>
    %190 = arith.subf %173, %185 : vector<8x1xf32>
    %191 = math.exp %190 : vector<8x1xf32>
    %192 = arith.subf %177, %185 : vector<8x1xf32>
    %193 = math.exp %192 : vector<8x1xf32>
    %194 = arith.subf %181, %185 : vector<8x1xf32>
    %195 = math.exp %194 : vector<8x1xf32>
    %196 = arith.addf %187, %189 : vector<8x1xf32>
    %197 = arith.addf %196, %191 : vector<8x1xf32>
    %198 = arith.addf %197, %193 : vector<8x1xf32>
    %199 = arith.addf %198, %195 : vector<8x1xf32>
    %200 = tpu.reciprocal %199 {approx = true} : vector<8x1xf32> -> vector<8x1xf32>
    %cst_60 = arith.constant 2.000000e-01 : f32
    %201 = vector.broadcast %cst_60 : f32 to vector<8x1xf32>
    %202 = arith.mulf %200, %201 : vector<8x1xf32>
    %203 = arith.mulf %187, %202 : vector<8x1xf32>
    %204 = arith.addf %153, %203 : vector<8x1xf32>
    %205 = arith.mulf %189, %202 : vector<8x1xf32>
    %206 = arith.addf %155, %205 : vector<8x1xf32>
    %207 = arith.mulf %191, %202 : vector<8x1xf32>
    %208 = arith.addf %157, %207 : vector<8x1xf32>
    %209 = arith.mulf %193, %202 : vector<8x1xf32>
    %210 = arith.addf %159, %209 : vector<8x1xf32>
    %211 = arith.mulf %195, %202 : vector<8x1xf32>
    %212 = arith.addf %161, %211 : vector<8x1xf32>
    %213 = arith.mulf %43, %45 : vector<8x64xf32>
    %cst_61 = arith.constant dense<0.000000e+00> : vector<8xf32>
    %214 = vector.multi_reduction <add>, %213, %cst_61 [1] : vector<8x64xf32> to vector<8xf32>
    %215 = vector.shape_cast %214 : vector<8xf32> to vector<8x1xf32>
    %216 = arith.addf %215, %30 : vector<8x1xf32>
    %217 = arith.mulf %43, %46 : vector<8x64xf32>
    %cst_62 = arith.constant dense<0.000000e+00> : vector<8xf32>
    %218 = vector.multi_reduction <add>, %217, %cst_62 [1] : vector<8x64xf32> to vector<8xf32>
    %219 = vector.shape_cast %218 : vector<8xf32> to vector<8x1xf32>
    %220 = arith.addf %219, %32 : vector<8x1xf32>
    %221 = arith.mulf %43, %47 : vector<8x64xf32>
    %cst_63 = arith.constant dense<0.000000e+00> : vector<8xf32>
    %222 = vector.multi_reduction <add>, %221, %cst_63 [1] : vector<8x64xf32> to vector<8xf32>
    %223 = vector.shape_cast %222 : vector<8xf32> to vector<8x1xf32>
    %224 = arith.addf %223, %34 : vector<8x1xf32>
    %225 = arith.mulf %43, %48 : vector<8x64xf32>
    %cst_64 = arith.constant dense<0.000000e+00> : vector<8xf32>
    %226 = vector.multi_reduction <add>, %225, %cst_64 [1] : vector<8x64xf32> to vector<8xf32>
    %227 = vector.shape_cast %226 : vector<8xf32> to vector<8x1xf32>
    %228 = arith.addf %227, %36 : vector<8x1xf32>
    %229 = arith.mulf %43, %49 : vector<8x64xf32>
    %cst_65 = arith.constant dense<0.000000e+00> : vector<8xf32>
    %230 = vector.multi_reduction <add>, %229, %cst_65 [1] : vector<8x64xf32> to vector<8xf32>
    %231 = vector.shape_cast %230 : vector<8xf32> to vector<8x1xf32>
    %232 = arith.addf %231, %38 : vector<8x1xf32>
    %233 = arith.maximumf %216, %220 : vector<8x1xf32>
    %234 = arith.maximumf %233, %224 : vector<8x1xf32>
    %235 = arith.maximumf %234, %228 : vector<8x1xf32>
    %236 = arith.maximumf %235, %232 : vector<8x1xf32>
    %237 = arith.subf %216, %236 : vector<8x1xf32>
    %238 = math.exp %237 : vector<8x1xf32>
    %239 = arith.subf %220, %236 : vector<8x1xf32>
    %240 = math.exp %239 : vector<8x1xf32>
    %241 = arith.subf %224, %236 : vector<8x1xf32>
    %242 = math.exp %241 : vector<8x1xf32>
    %243 = arith.subf %228, %236 : vector<8x1xf32>
    %244 = math.exp %243 : vector<8x1xf32>
    %245 = arith.subf %232, %236 : vector<8x1xf32>
    %246 = math.exp %245 : vector<8x1xf32>
    %247 = arith.addf %238, %240 : vector<8x1xf32>
    %248 = arith.addf %247, %242 : vector<8x1xf32>
    %249 = arith.addf %248, %244 : vector<8x1xf32>
    %250 = arith.addf %249, %246 : vector<8x1xf32>
    %251 = tpu.reciprocal %250 {approx = true} : vector<8x1xf32> -> vector<8x1xf32>
    %cst_66 = arith.constant 2.000000e-01 : f32
    %252 = vector.broadcast %cst_66 : f32 to vector<8x1xf32>
    %253 = arith.mulf %251, %252 : vector<8x1xf32>
    %254 = arith.mulf %238, %253 : vector<8x1xf32>
    %255 = arith.addf %204, %254 : vector<8x1xf32>
    %256 = arith.mulf %240, %253 : vector<8x1xf32>
    %257 = arith.addf %206, %256 : vector<8x1xf32>
    %258 = arith.mulf %242, %253 : vector<8x1xf32>
    %259 = arith.addf %208, %258 : vector<8x1xf32>
    %260 = arith.mulf %244, %253 : vector<8x1xf32>
    %261 = arith.addf %210, %260 : vector<8x1xf32>
    %262 = arith.mulf %246, %253 : vector<8x1xf32>
    %263 = arith.addf %212, %262 : vector<8x1xf32>
    %264 = arith.mulf %44, %45 : vector<8x64xf32>
    %cst_67 = arith.constant dense<0.000000e+00> : vector<8xf32>
    %265 = vector.multi_reduction <add>, %264, %cst_67 [1] : vector<8x64xf32> to vector<8xf32>
    %266 = vector.shape_cast %265 : vector<8xf32> to vector<8x1xf32>
    %267 = arith.addf %266, %30 : vector<8x1xf32>
    %268 = arith.mulf %44, %46 : vector<8x64xf32>
    %cst_68 = arith.constant dense<0.000000e+00> : vector<8xf32>
    %269 = vector.multi_reduction <add>, %268, %cst_68 [1] : vector<8x64xf32> to vector<8xf32>
    %270 = vector.shape_cast %269 : vector<8xf32> to vector<8x1xf32>
    %271 = arith.addf %270, %32 : vector<8x1xf32>
    %272 = arith.mulf %44, %47 : vector<8x64xf32>
    %cst_69 = arith.constant dense<0.000000e+00> : vector<8xf32>
    %273 = vector.multi_reduction <add>, %272, %cst_69 [1] : vector<8x64xf32> to vector<8xf32>
    %274 = vector.shape_cast %273 : vector<8xf32> to vector<8x1xf32>
    %275 = arith.addf %274, %34 : vector<8x1xf32>
    %276 = arith.mulf %44, %48 : vector<8x64xf32>
    %cst_70 = arith.constant dense<0.000000e+00> : vector<8xf32>
    %277 = vector.multi_reduction <add>, %276, %cst_70 [1] : vector<8x64xf32> to vector<8xf32>
    %278 = vector.shape_cast %277 : vector<8xf32> to vector<8x1xf32>
    %279 = arith.addf %278, %36 : vector<8x1xf32>
    %280 = arith.mulf %44, %49 : vector<8x64xf32>
    %cst_71 = arith.constant dense<0.000000e+00> : vector<8xf32>
    %281 = vector.multi_reduction <add>, %280, %cst_71 [1] : vector<8x64xf32> to vector<8xf32>
    %282 = vector.shape_cast %281 : vector<8xf32> to vector<8x1xf32>
    %283 = arith.addf %282, %38 : vector<8x1xf32>
    %284 = arith.maximumf %267, %271 : vector<8x1xf32>
    %285 = arith.maximumf %284, %275 : vector<8x1xf32>
    %286 = arith.maximumf %285, %279 : vector<8x1xf32>
    %287 = arith.maximumf %286, %283 : vector<8x1xf32>
    %288 = arith.subf %267, %287 : vector<8x1xf32>
    %289 = math.exp %288 : vector<8x1xf32>
    %290 = arith.subf %271, %287 : vector<8x1xf32>
    %291 = math.exp %290 : vector<8x1xf32>
    %292 = arith.subf %275, %287 : vector<8x1xf32>
    %293 = math.exp %292 : vector<8x1xf32>
    %294 = arith.subf %279, %287 : vector<8x1xf32>
    %295 = math.exp %294 : vector<8x1xf32>
    %296 = arith.subf %283, %287 : vector<8x1xf32>
    %297 = math.exp %296 : vector<8x1xf32>
    %298 = arith.addf %289, %291 : vector<8x1xf32>
    %299 = arith.addf %298, %293 : vector<8x1xf32>
    %300 = arith.addf %299, %295 : vector<8x1xf32>
    %301 = arith.addf %300, %297 : vector<8x1xf32>
    %302 = tpu.reciprocal %301 {approx = true} : vector<8x1xf32> -> vector<8x1xf32>
    %cst_72 = arith.constant 2.000000e-01 : f32
    %303 = vector.broadcast %cst_72 : f32 to vector<8x1xf32>
    %304 = arith.mulf %302, %303 : vector<8x1xf32>
    %305 = arith.mulf %289, %304 : vector<8x1xf32>
    %306 = arith.addf %255, %305 : vector<8x1xf32>
    %307 = arith.mulf %291, %304 : vector<8x1xf32>
    %308 = arith.addf %257, %307 : vector<8x1xf32>
    %309 = arith.mulf %293, %304 : vector<8x1xf32>
    %310 = arith.addf %259, %309 : vector<8x1xf32>
    %311 = arith.mulf %295, %304 : vector<8x1xf32>
    %312 = arith.addf %261, %311 : vector<8x1xf32>
    %313 = arith.mulf %297, %304 : vector<8x1xf32>
    %314 = arith.addf %263, %313 : vector<8x1xf32>
    %cst_73 = arith.constant 0.000000e+00 : f32
    %315 = vector.broadcast %cst_73 : f32 to vector<8x64xf32>
    %316 = vector.broadcast %306 : vector<8x1xf32> to vector<8x64xf32>
    %317 = arith.mulf %316, %50 : vector<8x64xf32>
    %318 = arith.addf %315, %317 : vector<8x64xf32>
    %319 = vector.broadcast %308 : vector<8x1xf32> to vector<8x64xf32>
    %320 = arith.mulf %319, %51 : vector<8x64xf32>
    %321 = arith.addf %318, %320 : vector<8x64xf32>
    %322 = vector.broadcast %310 : vector<8x1xf32> to vector<8x64xf32>
    %323 = arith.mulf %322, %52 : vector<8x64xf32>
    %324 = arith.addf %321, %323 : vector<8x64xf32>
    %325 = vector.broadcast %312 : vector<8x1xf32> to vector<8x64xf32>
    %326 = arith.mulf %325, %53 : vector<8x64xf32>
    %327 = arith.addf %324, %326 : vector<8x64xf32>
    %328 = vector.broadcast %314 : vector<8x1xf32> to vector<8x64xf32>
    %329 = arith.mulf %328, %54 : vector<8x64xf32>
    %330 = arith.addf %327, %329 : vector<8x64xf32>
    %331 = arith.truncf %330 : vector<8x64xf32> to vector<8x64xbf16>
    %332 = vector.extract_strided_slice %2 {offsets = [0, 0], sizes = [64, 128], strides = [1, 1]} : vector<128x128xbf16> to vector<64x128xbf16>
    %cst_74 = arith.constant dense<0.000000e+00> : vector<8x128xf32>
    %333 = tpu.matmul %331, %332, %cst_74 {dimension_numbers = #tpu.dot_dimension_numbers<[1], [0], [0], [1], [0, 0, 1, 1], [], []>} : vector<8x64xbf16>, vector<64x128xbf16>, vector<8x128xf32> -> vector<8x128xf32>
    %334 = arith.addf %39, %333 : vector<8x128xf32>
    %335 = vector.extract_strided_slice %8 {offsets = [0, 64], sizes = [8, 64], strides = [1, 1]} : vector<8x384xf32> to vector<8x64xf32>
    %336 = vector.extract_strided_slice %13 {offsets = [0, 64], sizes = [8, 64], strides = [1, 1]} : vector<8x384xf32> to vector<8x64xf32>
    %337 = vector.extract_strided_slice %18 {offsets = [0, 64], sizes = [8, 64], strides = [1, 1]} : vector<8x384xf32> to vector<8x64xf32>
    %338 = vector.extract_strided_slice %23 {offsets = [0, 64], sizes = [8, 64], strides = [1, 1]} : vector<8x384xf32> to vector<8x64xf32>
    %339 = vector.extract_strided_slice %28 {offsets = [0, 64], sizes = [8, 64], strides = [1, 1]} : vector<8x384xf32> to vector<8x64xf32>
    %340 = vector.extract_strided_slice %8 {offsets = [0, 192], sizes = [8, 64], strides = [1, 1]} : vector<8x384xf32> to vector<8x64xf32>
    %341 = vector.extract_strided_slice %13 {offsets = [0, 192], sizes = [8, 64], strides = [1, 1]} : vector<8x384xf32> to vector<8x64xf32>
    %342 = vector.extract_strided_slice %18 {offsets = [0, 192], sizes = [8, 64], strides = [1, 1]} : vector<8x384xf32> to vector<8x64xf32>
    %343 = vector.extract_strided_slice %23 {offsets = [0, 192], sizes = [8, 64], strides = [1, 1]} : vector<8x384xf32> to vector<8x64xf32>
    %344 = vector.extract_strided_slice %28 {offsets = [0, 192], sizes = [8, 64], strides = [1, 1]} : vector<8x384xf32> to vector<8x64xf32>
    %345 = vector.extract_strided_slice %8 {offsets = [0, 320], sizes = [8, 64], strides = [1, 1]} : vector<8x384xf32> to vector<8x64xf32>
    %346 = vector.extract_strided_slice %13 {offsets = [0, 320], sizes = [8, 64], strides = [1, 1]} : vector<8x384xf32> to vector<8x64xf32>
    %347 = vector.extract_strided_slice %18 {offsets = [0, 320], sizes = [8, 64], strides = [1, 1]} : vector<8x384xf32> to vector<8x64xf32>
    %348 = vector.extract_strided_slice %23 {offsets = [0, 320], sizes = [8, 64], strides = [1, 1]} : vector<8x384xf32> to vector<8x64xf32>
    %349 = vector.extract_strided_slice %28 {offsets = [0, 320], sizes = [8, 64], strides = [1, 1]} : vector<8x384xf32> to vector<8x64xf32>
    %cst_75 = arith.constant 0.000000e+00 : f32
    %350 = vector.broadcast %cst_75 : f32 to vector<8x1xf32>
    %cst_76 = arith.constant 0.000000e+00 : f32
    %351 = vector.broadcast %cst_76 : f32 to vector<8x1xf32>
    %cst_77 = arith.constant 0.000000e+00 : f32
    %352 = vector.broadcast %cst_77 : f32 to vector<8x1xf32>
    %cst_78 = arith.constant 0.000000e+00 : f32
    %353 = vector.broadcast %cst_78 : f32 to vector<8x1xf32>
    %cst_79 = arith.constant 0.000000e+00 : f32
    %354 = vector.broadcast %cst_79 : f32 to vector<8x1xf32>
    %355 = arith.mulf %335, %340 : vector<8x64xf32>
    %cst_80 = arith.constant dense<0.000000e+00> : vector<8xf32>
    %356 = vector.multi_reduction <add>, %355, %cst_80 [1] : vector<8x64xf32> to vector<8xf32>
    %357 = vector.shape_cast %356 : vector<8xf32> to vector<8x1xf32>
    %358 = arith.addf %357, %30 : vector<8x1xf32>
    %359 = arith.mulf %335, %341 : vector<8x64xf32>
    %cst_81 = arith.constant dense<0.000000e+00> : vector<8xf32>
    %360 = vector.multi_reduction <add>, %359, %cst_81 [1] : vector<8x64xf32> to vector<8xf32>
    %361 = vector.shape_cast %360 : vector<8xf32> to vector<8x1xf32>
    %362 = arith.addf %361, %32 : vector<8x1xf32>
    %363 = arith.mulf %335, %342 : vector<8x64xf32>
    %cst_82 = arith.constant dense<0.000000e+00> : vector<8xf32>
    %364 = vector.multi_reduction <add>, %363, %cst_82 [1] : vector<8x64xf32> to vector<8xf32>
    %365 = vector.shape_cast %364 : vector<8xf32> to vector<8x1xf32>
    %366 = arith.addf %365, %34 : vector<8x1xf32>
    %367 = arith.mulf %335, %343 : vector<8x64xf32>
    %cst_83 = arith.constant dense<0.000000e+00> : vector<8xf32>
    %368 = vector.multi_reduction <add>, %367, %cst_83 [1] : vector<8x64xf32> to vector<8xf32>
    %369 = vector.shape_cast %368 : vector<8xf32> to vector<8x1xf32>
    %370 = arith.addf %369, %36 : vector<8x1xf32>
    %371 = arith.mulf %335, %344 : vector<8x64xf32>
    %cst_84 = arith.constant dense<0.000000e+00> : vector<8xf32>
    %372 = vector.multi_reduction <add>, %371, %cst_84 [1] : vector<8x64xf32> to vector<8xf32>
    %373 = vector.shape_cast %372 : vector<8xf32> to vector<8x1xf32>
    %374 = arith.addf %373, %38 : vector<8x1xf32>
    %375 = arith.maximumf %358, %362 : vector<8x1xf32>
    %376 = arith.maximumf %375, %366 : vector<8x1xf32>
    %377 = arith.maximumf %376, %370 : vector<8x1xf32>
    %378 = arith.maximumf %377, %374 : vector<8x1xf32>
    %379 = arith.subf %358, %378 : vector<8x1xf32>
    %380 = math.exp %379 : vector<8x1xf32>
    %381 = arith.subf %362, %378 : vector<8x1xf32>
    %382 = math.exp %381 : vector<8x1xf32>
    %383 = arith.subf %366, %378 : vector<8x1xf32>
    %384 = math.exp %383 : vector<8x1xf32>
    %385 = arith.subf %370, %378 : vector<8x1xf32>
    %386 = math.exp %385 : vector<8x1xf32>
    %387 = arith.subf %374, %378 : vector<8x1xf32>
    %388 = math.exp %387 : vector<8x1xf32>
    %389 = arith.addf %380, %382 : vector<8x1xf32>
    %390 = arith.addf %389, %384 : vector<8x1xf32>
    %391 = arith.addf %390, %386 : vector<8x1xf32>
    %392 = arith.addf %391, %388 : vector<8x1xf32>
    %393 = tpu.reciprocal %392 {approx = true} : vector<8x1xf32> -> vector<8x1xf32>
    %cst_85 = arith.constant 2.000000e-01 : f32
    %394 = vector.broadcast %cst_85 : f32 to vector<8x1xf32>
    %395 = arith.mulf %393, %394 : vector<8x1xf32>
    %396 = arith.mulf %380, %395 : vector<8x1xf32>
    %397 = arith.addf %350, %396 : vector<8x1xf32>
    %398 = arith.mulf %382, %395 : vector<8x1xf32>
    %399 = arith.addf %351, %398 : vector<8x1xf32>
    %400 = arith.mulf %384, %395 : vector<8x1xf32>
    %401 = arith.addf %352, %400 : vector<8x1xf32>
    %402 = arith.mulf %386, %395 : vector<8x1xf32>
    %403 = arith.addf %353, %402 : vector<8x1xf32>
    %404 = arith.mulf %388, %395 : vector<8x1xf32>
    %405 = arith.addf %354, %404 : vector<8x1xf32>
    %406 = arith.mulf %336, %340 : vector<8x64xf32>
    %cst_86 = arith.constant dense<0.000000e+00> : vector<8xf32>
    %407 = vector.multi_reduction <add>, %406, %cst_86 [1] : vector<8x64xf32> to vector<8xf32>
    %408 = vector.shape_cast %407 : vector<8xf32> to vector<8x1xf32>
    %409 = arith.addf %408, %30 : vector<8x1xf32>
    %410 = arith.mulf %336, %341 : vector<8x64xf32>
    %cst_87 = arith.constant dense<0.000000e+00> : vector<8xf32>
    %411 = vector.multi_reduction <add>, %410, %cst_87 [1] : vector<8x64xf32> to vector<8xf32>
    %412 = vector.shape_cast %411 : vector<8xf32> to vector<8x1xf32>
    %413 = arith.addf %412, %32 : vector<8x1xf32>
    %414 = arith.mulf %336, %342 : vector<8x64xf32>
    %cst_88 = arith.constant dense<0.000000e+00> : vector<8xf32>
    %415 = vector.multi_reduction <add>, %414, %cst_88 [1] : vector<8x64xf32> to vector<8xf32>
    %416 = vector.shape_cast %415 : vector<8xf32> to vector<8x1xf32>
    %417 = arith.addf %416, %34 : vector<8x1xf32>
    %418 = arith.mulf %336, %343 : vector<8x64xf32>
    %cst_89 = arith.constant dense<0.000000e+00> : vector<8xf32>
    %419 = vector.multi_reduction <add>, %418, %cst_89 [1] : vector<8x64xf32> to vector<8xf32>
    %420 = vector.shape_cast %419 : vector<8xf32> to vector<8x1xf32>
    %421 = arith.addf %420, %36 : vector<8x1xf32>
    %422 = arith.mulf %336, %344 : vector<8x64xf32>
    %cst_90 = arith.constant dense<0.000000e+00> : vector<8xf32>
    %423 = vector.multi_reduction <add>, %422, %cst_90 [1] : vector<8x64xf32> to vector<8xf32>
    %424 = vector.shape_cast %423 : vector<8xf32> to vector<8x1xf32>
    %425 = arith.addf %424, %38 : vector<8x1xf32>
    %426 = arith.maximumf %409, %413 : vector<8x1xf32>
    %427 = arith.maximumf %426, %417 : vector<8x1xf32>
    %428 = arith.maximumf %427, %421 : vector<8x1xf32>
    %429 = arith.maximumf %428, %425 : vector<8x1xf32>
    %430 = arith.subf %409, %429 : vector<8x1xf32>
    %431 = math.exp %430 : vector<8x1xf32>
    %432 = arith.subf %413, %429 : vector<8x1xf32>
    %433 = math.exp %432 : vector<8x1xf32>
    %434 = arith.subf %417, %429 : vector<8x1xf32>
    %435 = math.exp %434 : vector<8x1xf32>
    %436 = arith.subf %421, %429 : vector<8x1xf32>
    %437 = math.exp %436 : vector<8x1xf32>
    %438 = arith.subf %425, %429 : vector<8x1xf32>
    %439 = math.exp %438 : vector<8x1xf32>
    %440 = arith.addf %431, %433 : vector<8x1xf32>
    %441 = arith.addf %440, %435 : vector<8x1xf32>
    %442 = arith.addf %441, %437 : vector<8x1xf32>
    %443 = arith.addf %442, %439 : vector<8x1xf32>
    %444 = tpu.reciprocal %443 {approx = true} : vector<8x1xf32> -> vector<8x1xf32>
    %cst_91 = arith.constant 2.000000e-01 : f32
    %445 = vector.broadcast %cst_91 : f32 to vector<8x1xf32>
    %446 = arith.mulf %444, %445 : vector<8x1xf32>
    %447 = arith.mulf %431, %446 : vector<8x1xf32>
    %448 = arith.addf %397, %447 : vector<8x1xf32>
    %449 = arith.mulf %433, %446 : vector<8x1xf32>
    %450 = arith.addf %399, %449 : vector<8x1xf32>
    %451 = arith.mulf %435, %446 : vector<8x1xf32>
    %452 = arith.addf %401, %451 : vector<8x1xf32>
    %453 = arith.mulf %437, %446 : vector<8x1xf32>
    %454 = arith.addf %403, %453 : vector<8x1xf32>
    %455 = arith.mulf %439, %446 : vector<8x1xf32>
    %456 = arith.addf %405, %455 : vector<8x1xf32>
    %457 = arith.mulf %337, %340 : vector<8x64xf32>
    %cst_92 = arith.constant dense<0.000000e+00> : vector<8xf32>
    %458 = vector.multi_reduction <add>, %457, %cst_92 [1] : vector<8x64xf32> to vector<8xf32>
    %459 = vector.shape_cast %458 : vector<8xf32> to vector<8x1xf32>
    %460 = arith.addf %459, %30 : vector<8x1xf32>
    %461 = arith.mulf %337, %341 : vector<8x64xf32>
    %cst_93 = arith.constant dense<0.000000e+00> : vector<8xf32>
    %462 = vector.multi_reduction <add>, %461, %cst_93 [1] : vector<8x64xf32> to vector<8xf32>
    %463 = vector.shape_cast %462 : vector<8xf32> to vector<8x1xf32>
    %464 = arith.addf %463, %32 : vector<8x1xf32>
    %465 = arith.mulf %337, %342 : vector<8x64xf32>
    %cst_94 = arith.constant dense<0.000000e+00> : vector<8xf32>
    %466 = vector.multi_reduction <add>, %465, %cst_94 [1] : vector<8x64xf32> to vector<8xf32>
    %467 = vector.shape_cast %466 : vector<8xf32> to vector<8x1xf32>
    %468 = arith.addf %467, %34 : vector<8x1xf32>
    %469 = arith.mulf %337, %343 : vector<8x64xf32>
    %cst_95 = arith.constant dense<0.000000e+00> : vector<8xf32>
    %470 = vector.multi_reduction <add>, %469, %cst_95 [1] : vector<8x64xf32> to vector<8xf32>
    %471 = vector.shape_cast %470 : vector<8xf32> to vector<8x1xf32>
    %472 = arith.addf %471, %36 : vector<8x1xf32>
    %473 = arith.mulf %337, %344 : vector<8x64xf32>
    %cst_96 = arith.constant dense<0.000000e+00> : vector<8xf32>
    %474 = vector.multi_reduction <add>, %473, %cst_96 [1] : vector<8x64xf32> to vector<8xf32>
    %475 = vector.shape_cast %474 : vector<8xf32> to vector<8x1xf32>
    %476 = arith.addf %475, %38 : vector<8x1xf32>
    %477 = arith.maximumf %460, %464 : vector<8x1xf32>
    %478 = arith.maximumf %477, %468 : vector<8x1xf32>
    %479 = arith.maximumf %478, %472 : vector<8x1xf32>
    %480 = arith.maximumf %479, %476 : vector<8x1xf32>
    %481 = arith.subf %460, %480 : vector<8x1xf32>
    %482 = math.exp %481 : vector<8x1xf32>
    %483 = arith.subf %464, %480 : vector<8x1xf32>
    %484 = math.exp %483 : vector<8x1xf32>
    %485 = arith.subf %468, %480 : vector<8x1xf32>
    %486 = math.exp %485 : vector<8x1xf32>
    %487 = arith.subf %472, %480 : vector<8x1xf32>
    %488 = math.exp %487 : vector<8x1xf32>
    %489 = arith.subf %476, %480 : vector<8x1xf32>
    %490 = math.exp %489 : vector<8x1xf32>
    %491 = arith.addf %482, %484 : vector<8x1xf32>
    %492 = arith.addf %491, %486 : vector<8x1xf32>
    %493 = arith.addf %492, %488 : vector<8x1xf32>
    %494 = arith.addf %493, %490 : vector<8x1xf32>
    %495 = tpu.reciprocal %494 {approx = true} : vector<8x1xf32> -> vector<8x1xf32>
    %cst_97 = arith.constant 2.000000e-01 : f32
    %496 = vector.broadcast %cst_97 : f32 to vector<8x1xf32>
    %497 = arith.mulf %495, %496 : vector<8x1xf32>
    %498 = arith.mulf %482, %497 : vector<8x1xf32>
    %499 = arith.addf %448, %498 : vector<8x1xf32>
    %500 = arith.mulf %484, %497 : vector<8x1xf32>
    %501 = arith.addf %450, %500 : vector<8x1xf32>
    %502 = arith.mulf %486, %497 : vector<8x1xf32>
    %503 = arith.addf %452, %502 : vector<8x1xf32>
    %504 = arith.mulf %488, %497 : vector<8x1xf32>
    %505 = arith.addf %454, %504 : vector<8x1xf32>
    %506 = arith.mulf %490, %497 : vector<8x1xf32>
    %507 = arith.addf %456, %506 : vector<8x1xf32>
    %508 = arith.mulf %338, %340 : vector<8x64xf32>
    %cst_98 = arith.constant dense<0.000000e+00> : vector<8xf32>
    %509 = vector.multi_reduction <add>, %508, %cst_98 [1] : vector<8x64xf32> to vector<8xf32>
    %510 = vector.shape_cast %509 : vector<8xf32> to vector<8x1xf32>
    %511 = arith.addf %510, %30 : vector<8x1xf32>
    %512 = arith.mulf %338, %341 : vector<8x64xf32>
    %cst_99 = arith.constant dense<0.000000e+00> : vector<8xf32>
    %513 = vector.multi_reduction <add>, %512, %cst_99 [1] : vector<8x64xf32> to vector<8xf32>
    %514 = vector.shape_cast %513 : vector<8xf32> to vector<8x1xf32>
    %515 = arith.addf %514, %32 : vector<8x1xf32>
    %516 = arith.mulf %338, %342 : vector<8x64xf32>
    %cst_100 = arith.constant dense<0.000000e+00> : vector<8xf32>
    %517 = vector.multi_reduction <add>, %516, %cst_100 [1] : vector<8x64xf32> to vector<8xf32>
    %518 = vector.shape_cast %517 : vector<8xf32> to vector<8x1xf32>
    %519 = arith.addf %518, %34 : vector<8x1xf32>
    %520 = arith.mulf %338, %343 : vector<8x64xf32>
    %cst_101 = arith.constant dense<0.000000e+00> : vector<8xf32>
    %521 = vector.multi_reduction <add>, %520, %cst_101 [1] : vector<8x64xf32> to vector<8xf32>
    %522 = vector.shape_cast %521 : vector<8xf32> to vector<8x1xf32>
    %523 = arith.addf %522, %36 : vector<8x1xf32>
    %524 = arith.mulf %338, %344 : vector<8x64xf32>
    %cst_102 = arith.constant dense<0.000000e+00> : vector<8xf32>
    %525 = vector.multi_reduction <add>, %524, %cst_102 [1] : vector<8x64xf32> to vector<8xf32>
    %526 = vector.shape_cast %525 : vector<8xf32> to vector<8x1xf32>
    %527 = arith.addf %526, %38 : vector<8x1xf32>
    %528 = arith.maximumf %511, %515 : vector<8x1xf32>
    %529 = arith.maximumf %528, %519 : vector<8x1xf32>
    %530 = arith.maximumf %529, %523 : vector<8x1xf32>
    %531 = arith.maximumf %530, %527 : vector<8x1xf32>
    %532 = arith.subf %511, %531 : vector<8x1xf32>
    %533 = math.exp %532 : vector<8x1xf32>
    %534 = arith.subf %515, %531 : vector<8x1xf32>
    %535 = math.exp %534 : vector<8x1xf32>
    %536 = arith.subf %519, %531 : vector<8x1xf32>
    %537 = math.exp %536 : vector<8x1xf32>
    %538 = arith.subf %523, %531 : vector<8x1xf32>
    %539 = math.exp %538 : vector<8x1xf32>
    %540 = arith.subf %527, %531 : vector<8x1xf32>
    %541 = math.exp %540 : vector<8x1xf32>
    %542 = arith.addf %533, %535 : vector<8x1xf32>
    %543 = arith.addf %542, %537 : vector<8x1xf32>
    %544 = arith.addf %543, %539 : vector<8x1xf32>
    %545 = arith.addf %544, %541 : vector<8x1xf32>
    %546 = tpu.reciprocal %545 {approx = true} : vector<8x1xf32> -> vector<8x1xf32>
    %cst_103 = arith.constant 2.000000e-01 : f32
    %547 = vector.broadcast %cst_103 : f32 to vector<8x1xf32>
    %548 = arith.mulf %546, %547 : vector<8x1xf32>
    %549 = arith.mulf %533, %548 : vector<8x1xf32>
    %550 = arith.addf %499, %549 : vector<8x1xf32>
    %551 = arith.mulf %535, %548 : vector<8x1xf32>
    %552 = arith.addf %501, %551 : vector<8x1xf32>
    %553 = arith.mulf %537, %548 : vector<8x1xf32>
    %554 = arith.addf %503, %553 : vector<8x1xf32>
    %555 = arith.mulf %539, %548 : vector<8x1xf32>
    %556 = arith.addf %505, %555 : vector<8x1xf32>
    %557 = arith.mulf %541, %548 : vector<8x1xf32>
    %558 = arith.addf %507, %557 : vector<8x1xf32>
    %559 = arith.mulf %339, %340 : vector<8x64xf32>
    %cst_104 = arith.constant dense<0.000000e+00> : vector<8xf32>
    %560 = vector.multi_reduction <add>, %559, %cst_104 [1] : vector<8x64xf32> to vector<8xf32>
    %561 = vector.shape_cast %560 : vector<8xf32> to vector<8x1xf32>
    %562 = arith.addf %561, %30 : vector<8x1xf32>
    %563 = arith.mulf %339, %341 : vector<8x64xf32>
    %cst_105 = arith.constant dense<0.000000e+00> : vector<8xf32>
    %564 = vector.multi_reduction <add>, %563, %cst_105 [1] : vector<8x64xf32> to vector<8xf32>
    %565 = vector.shape_cast %564 : vector<8xf32> to vector<8x1xf32>
    %566 = arith.addf %565, %32 : vector<8x1xf32>
    %567 = arith.mulf %339, %342 : vector<8x64xf32>
    %cst_106 = arith.constant dense<0.000000e+00> : vector<8xf32>
    %568 = vector.multi_reduction <add>, %567, %cst_106 [1] : vector<8x64xf32> to vector<8xf32>
    %569 = vector.shape_cast %568 : vector<8xf32> to vector<8x1xf32>
    %570 = arith.addf %569, %34 : vector<8x1xf32>
    %571 = arith.mulf %339, %343 : vector<8x64xf32>
    %cst_107 = arith.constant dense<0.000000e+00> : vector<8xf32>
    %572 = vector.multi_reduction <add>, %571, %cst_107 [1] : vector<8x64xf32> to vector<8xf32>
    %573 = vector.shape_cast %572 : vector<8xf32> to vector<8x1xf32>
    %574 = arith.addf %573, %36 : vector<8x1xf32>
    %575 = arith.mulf %339, %344 : vector<8x64xf32>
    %cst_108 = arith.constant dense<0.000000e+00> : vector<8xf32>
    %576 = vector.multi_reduction <add>, %575, %cst_108 [1] : vector<8x64xf32> to vector<8xf32>
    %577 = vector.shape_cast %576 : vector<8xf32> to vector<8x1xf32>
    %578 = arith.addf %577, %38 : vector<8x1xf32>
    %579 = arith.maximumf %562, %566 : vector<8x1xf32>
    %580 = arith.maximumf %579, %570 : vector<8x1xf32>
    %581 = arith.maximumf %580, %574 : vector<8x1xf32>
    %582 = arith.maximumf %581, %578 : vector<8x1xf32>
    %583 = arith.subf %562, %582 : vector<8x1xf32>
    %584 = math.exp %583 : vector<8x1xf32>
    %585 = arith.subf %566, %582 : vector<8x1xf32>
    %586 = math.exp %585 : vector<8x1xf32>
    %587 = arith.subf %570, %582 : vector<8x1xf32>
    %588 = math.exp %587 : vector<8x1xf32>
    %589 = arith.subf %574, %582 : vector<8x1xf32>
    %590 = math.exp %589 : vector<8x1xf32>
    %591 = arith.subf %578, %582 : vector<8x1xf32>
    %592 = math.exp %591 : vector<8x1xf32>
    %593 = arith.addf %584, %586 : vector<8x1xf32>
    %594 = arith.addf %593, %588 : vector<8x1xf32>
    %595 = arith.addf %594, %590 : vector<8x1xf32>
    %596 = arith.addf %595, %592 : vector<8x1xf32>
    %597 = tpu.reciprocal %596 {approx = true} : vector<8x1xf32> -> vector<8x1xf32>
    %cst_109 = arith.constant 2.000000e-01 : f32
    %598 = vector.broadcast %cst_109 : f32 to vector<8x1xf32>
    %599 = arith.mulf %597, %598 : vector<8x1xf32>
    %600 = arith.mulf %584, %599 : vector<8x1xf32>
    %601 = arith.addf %550, %600 : vector<8x1xf32>
    %602 = arith.mulf %586, %599 : vector<8x1xf32>
    %603 = arith.addf %552, %602 : vector<8x1xf32>
    %604 = arith.mulf %588, %599 : vector<8x1xf32>
    %605 = arith.addf %554, %604 : vector<8x1xf32>
    %606 = arith.mulf %590, %599 : vector<8x1xf32>
    %607 = arith.addf %556, %606 : vector<8x1xf32>
    %608 = arith.mulf %592, %599 : vector<8x1xf32>
    %609 = arith.addf %558, %608 : vector<8x1xf32>
    %cst_110 = arith.constant 0.000000e+00 : f32
    %610 = vector.broadcast %cst_110 : f32 to vector<8x64xf32>
    %611 = vector.broadcast %601 : vector<8x1xf32> to vector<8x64xf32>
    %612 = arith.mulf %611, %345 : vector<8x64xf32>
    %613 = arith.addf %610, %612 : vector<8x64xf32>
    %614 = vector.broadcast %603 : vector<8x1xf32> to vector<8x64xf32>
    %615 = arith.mulf %614, %346 : vector<8x64xf32>
    %616 = arith.addf %613, %615 : vector<8x64xf32>
    %617 = vector.broadcast %605 : vector<8x1xf32> to vector<8x64xf32>
    %618 = arith.mulf %617, %347 : vector<8x64xf32>
    %619 = arith.addf %616, %618 : vector<8x64xf32>
    %620 = vector.broadcast %607 : vector<8x1xf32> to vector<8x64xf32>
    %621 = arith.mulf %620, %348 : vector<8x64xf32>
    %622 = arith.addf %619, %621 : vector<8x64xf32>
    %623 = vector.broadcast %609 : vector<8x1xf32> to vector<8x64xf32>
    %624 = arith.mulf %623, %349 : vector<8x64xf32>
    %625 = arith.addf %622, %624 : vector<8x64xf32>
    %626 = arith.truncf %625 : vector<8x64xf32> to vector<8x64xbf16>
    %627 = vector.extract_strided_slice %2 {offsets = [64, 0], sizes = [64, 128], strides = [1, 1]} : vector<128x128xbf16> to vector<64x128xbf16>
    %cst_111 = arith.constant dense<0.000000e+00> : vector<8x128xf32>
    %628 = tpu.matmul %626, %627, %cst_111 {dimension_numbers = #tpu.dot_dimension_numbers<[1], [0], [0], [1], [0, 0, 1, 1], [], []>} : vector<8x64xbf16>, vector<64x128xbf16>, vector<8x128xf32> -> vector<8x128xf32>
    %629 = arith.addf %334, %628 : vector<8x128xf32>
    %630 = vector.broadcast %3 : vector<1x128xf32> to vector<8x128xf32>
    %631 = arith.addf %629, %630 : vector<8x128xf32>
    %c0_112 = arith.constant 0 : index
    %c0_113 = arith.constant 0 : index
    %632 = vector.load %arg7[%c0_112, %c0_113] : memref<8x128xf32, #tpu.memory_space<vmem>>, vector<8x128xf32>
    tpu.vector_store %arg7[%c0_112, %c0_113], %631 {strides = array<i32>} : memref<8x128xf32, #tpu.memory_space<vmem>>, vector<8x128xf32>,
    return
  }
  func.func @transform_0(%arg0: i32) -> (i32, i32, i32) {
    %c0_i32 = arith.constant 0 : i32
    %c0_i32_0 = arith.constant 0 : i32
    %c0_i32_1 = arith.constant 0 : i32
    return %c0_i32, %arg0, %c0_i32_0 : i32, i32, i32
  }
  func.func @transform_1(%arg0: i32) -> (i32, i32, i32) {
    %c0_i32 = arith.constant 0 : i32
    %c0_i32_0 = arith.constant 0 : i32
    %c0_i32_1 = arith.constant 0 : i32
    return %c0_i32, %arg0, %c0_i32_0 : i32, i32, i32
  }
  func.func @transform_2(%arg0: i32) -> (i32, i32) {
    %c0_i32 = arith.constant 0 : i32
    %c0_i32_0 = arith.constant 0 : i32
    %c0_i32_1 = arith.constant 0 : i32
    return %c0_i32, %c0_i32_0 : i32, i32
  }
  func.func @transform_3(%arg0: i32) -> (i32, i32) {
    %c0_i32 = arith.constant 0 : i32
    %c0_i32_0 = arith.constant 0 : i32
    %c0_i32_1 = arith.constant 0 : i32
    return %c0_i32, %c0_i32_0 : i32, i32
  }
  func.func @transform_4(%arg0: i32) -> (i32, i32) {
    %c0_i32 = arith.constant 0 : i32
    %c0_i32_0 = arith.constant 0 : i32
    %c0_i32_1 = arith.constant 0 : i32
    return %c0_i32, %c0_i32_0 : i32, i32
  }
  func.func @transform_5(%arg0: i32) -> (i32, i32) {
    %c0_i32 = arith.constant 0 : i32
    %c0_i32_0 = arith.constant 0 : i32
    %c0_i32_1 = arith.constant 0 : i32
    return %c0_i32, %c0_i32_0 : i32, i32
  }
  func.func @transform_6(%arg0: i32) -> (i32, i32) {
    %c0_i32 = arith.constant 0 : i32
    %c0_i32_0 = arith.constant 0 : i32
    return %arg0, %c0_i32 : i32, i32
  }
}

</mosaic_0001>

<bundles_post_ra>
// kernel: tpu_custom_call.1
= control target key start
LH: loop header
LB: loop body
LE: loop exit
PB: predicated region body
PF: predicated region fallthrough
CT: control target
= control target key end

     0   :  { %11 = vsyncpa [#allocation3], 0  ;;  %s2959_s0 = inlined_call_operand.vmem [shape: bf16[5,8,128], index: 0, kind: input, shape index: {}]   ;;  %s2960_s1 = inlined_call_operand.vmem [shape: f32[5,8,1], index: 1, kind: input, shape index: {}]   ;;  %s2961_s2 = inlined_call_operand.hbm [shape: bf16[128,384], index: 2, kind: input, shape index: {}]   ;;  %s2962_s3 = inlined_call_operand.vmem [shape: f32[1,384], index: 3, kind: input, shape index: {}]   ;;  %s2963_s4 = inlined_call_operand.hbm [shape: bf16[128,128], index: 4, kind: input, shape index: {}]   ;;  %s2964_s5 = inlined_call_operand.vmem [shape: f32[1,128], index: 5, kind: input, shape index: {}]   ;;  %s2965_s6 = inlined_call_operand.hbm [shape: f32[8,128], index: 6, kind: output, shape index: {}]  }
   0x1   :  { %12 = vsyncpa [#allocation6], 0 }
   0x2   :  { %13 = vsyncpa [#allocation4], 0  ;;  %s2049_s21 = smov [#allocation2]   ;;  %s1977_s25 = scalar_lea.hbm %s2961_s2, 3072 }
   0x3   :  { %s23_s22 = sshll.u32 %s2049_s21, 4  ;;  %p1978_p0 = scmp.ne.s32.totalorder %s2961_s2, %s1977_s25  ;;  %s24_s22 = int_to_ptr.vmem [resolvable:$true] %s23_s22 }
   0x4   :  { %p1981_p1 = scmp.lt.u32.totalorder %s1977_s25, %s2961_s2 }
   0x6   :  { %p1983_p2 = pnand %p1981_p1, %p1978_p0 }
   0x8   :  { %1986 = shalt.err (!%p1983_p2)
}
   0x9   :  { %s1987_s30 = scalar_lea.vmem %s24_s22, 3072  ;;  %p1992_p4 = scmp.lt.s32.totalorder %s24_s22, %s24_s22 }
   0xa   :  { %p1988_p3 = scmp.ne.s32.totalorder %s24_s22, %s1987_s30  ;;  %p1993_p5 = scmp.lt.s32.totalorder %s1987_s30, %s1987_s30 }
   0xc   :  { %p1994_p6 = por %p1993_p5, %p1992_p4 }
   0xe   :  { %p1995_p7 = pnand %p1994_p6, %p1988_p3 }
  0x10   :  { %1998 = shalt.err (!%p1995_p7)
}
  0x11   :  { %s2050_s7 = smov 192   ;;  %s2051_s8 = smov 12  }
  0x12   :  { %29 = dma.hbm_to_vmem [thread:$0]  %s2961_s2, 3072, %s24_s22, [#allocation3], %s2050_s7, %s2050_s7, %s2051_s8  }
  0x13   :  { %s2052_s11 = smov [#allocation5]   ;;  %s1999_s15 = scalar_lea.hbm %s2963_s4, 1024 }
  0x14   :  { %s37_s12 = sshll.u32 %s2052_s11, 4  ;;  %p2000_p8 = scmp.ne.s32.totalorder %s2963_s4, %s1999_s15  ;;  %s38_s12 = int_to_ptr.vmem [resolvable:$true] %s37_s12 }
  0x15   :  { %p2003_p9 = scmp.lt.u32.totalorder %s1999_s15, %s2963_s4 }
  0x17   :  { %p2005_p10 = pnand %p2003_p9, %p2000_p8 }
  0x19   :  { %2008 = shalt.err (!%p2005_p10)
}
  0x1a   :  { %s2009_s20 = scalar_lea.vmem %s38_s12, 1024  ;;  %p2014_p12 = scmp.lt.s32.totalorder %s38_s12, %s38_s12 }
  0x1b   :  { %p2010_p11 = scmp.ne.s32.totalorder %s38_s12, %s2009_s20  ;;  %p2015_p13 = scmp.lt.s32.totalorder %s2009_s20, %s2009_s20 }
  0x1d   :  { %p2016_p0 = por %p2015_p13, %p2014_p12 }
  0x1f   :  { %p2017_p1 = pnand %p2016_p0, %p2010_p11 }
  0x21   :  { %2020 = shalt.err (!%p2017_p1)
}
  0x22   :  { %s2053_s2 = smov 64   ;;  %s2054_s21 = smov 4  }
  0x23   :  { %43 = dma.hbm_to_vmem [thread:$0]  %s2963_s4, 1024, %s38_s12, [#allocation6], %s2053_s2, %s2053_s2, %s2054_s21  }
  0x24   :  { %2043 = dma.done.wait [#allocation3], 3072  }
  0x25   :  { %2044 = vsyncadd [#allocation3], 4294964224 }
  0x26   :  { %2045 = dma.done.wait [#allocation6], 1024  }
  0x27   :  { %2046 = vsyncadd [#allocation6], 4294966272  ;;  %v2055_v0 = vmov 0   ;;  %v2123_v1 = vld [vmem:[#allocation2 + $0x4] ss:$12 sps:$4 sm:$0xff]   ;;  %v105_v22 = vlaneseq  ;;  %vm671_vm0 = vcmask 523264  }
  0x28   :  { %280 = vmatprep.mubr.bf16.mxu0 %v2055_v0  ;;  %1812 = vset.pattern.permute.xlu0 %v2055_v0  ;;  %v2125_v2 = vld [vmem:[#allocation2] ss:$12 sps:$4 sm:$0xff]   ;;  %v2128_v3 = vld [vmem:[#allocation2 + $0x1c] ss:$12 sps:$4 sm:$0xff]   ;;  %v2131_v4 = vld [vmem:[#allocation2 + $0x18] ss:$12 sps:$4 sm:$0xff]  }
  0x29   :  { %1811 = vset.pattern.permute.xlu1 %v2055_v0  ;;  %248 = vmatprep.subr.bf16.mxu0 %v2123_v1  ;;  %v2134_v5 = vld [vmem:[#allocation2 + $0x34] ss:$12 sps:$4 sm:$0xff]   ;;  %v2137_v6 = vld [vmem:[#allocation2 + $0x30] ss:$12 sps:$4 sm:$0xff]   ;;  %v2140_v7 = vld [vmem:[#allocation2 + $0x4c] ss:$12 sps:$4 sm:$0xff]  }
  0x2a   :  { %249 = vmatpush1.bf16.msra.mxu0 %v2125_v2  ;;  %v2143_v8 = vld [vmem:[#allocation2 + $0x48] ss:$12 sps:$4 sm:$0xff]   ;;  %v2145_v9 = vld [vmem:[#allocation2 + $0x64] ss:$12 sps:$4 sm:$0xff]   ;;  %v2148_v10 = vld [vmem:[#allocation2 + $0x60] ss:$12 sps:$4 sm:$0xff]  }
  0x2b   :  { %250 = vmatprep.subr.bf16.mxu0 %v2128_v3  ;;  %v2150_v11 = vld [vmem:[#allocation2 + $0x7c] ss:$12 sps:$4 sm:$0xff]   ;;  %v2154_v12 = vld [vmem:[#allocation2 + $0x78] ss:$12 sps:$4 sm:$0xff]   ;;  %v2156_v13 = vld [vmem:[#allocation2 + $0x94] ss:$12 sps:$4 sm:$0xff]  }
  0x2c   :  { %v2161_v14 = vld [vmem:[#allocation2 + $0x90] ss:$12 sps:$4 sm:$0xff]   ;;  %v2164_v15 = vld [vmem:[#allocation2 + $0xac] ss:$12 sps:$4 sm:$0xff]   ;;  %v2167_v16 = vld [vmem:[#allocation2 + $0xa8] ss:$12 sps:$4 sm:$0xff]  }
  0x2d   :  { %v2174_v17 = vld [vmem:[%s2959_s0] sm:$0xf]  ;;  %v2197_v18 = vld [vmem:[%s2959_s0 + $0x4] sm:$0xf]  ;;  %v2220_v19 = vld [vmem:[%s2959_s0 + $0x8] sm:$0xf] }
  0x2e   :  { %251 = vmatpush1.bf16.msra.mxu0 %v2131_v4  ;;  %v2243_v20 = vld [vmem:[%s2959_s0 + $0xc] sm:$0xf]  ;;  %v2266_v21 = vld [vmem:[%s2959_s0 + $0x10] sm:$0xf]  ;;  %v2269_v23 = vshrl.u32 %v105_v22, 7  ;;  %vm2057_vm1 = vmmov 0  }
  0x2f   :  { %252 = vmatprep.subr.bf16.mxu0 %v2134_v5  ;;  %v85_v25 = vld [vmem:[%s2962_s3] sm:$0x7]  ;;  %s2058_s27 = smov [#allocation7]  }
  0x30   :  { %v107_v24 = vsub.s32 0, %v2269_v23  ;;  %v111_v26 = vsub.s32 1, %v2269_v23  ;;  %s1569_s28 = sshll.u32 %s2058_s27, 4  ;;  %s1570_s28 = int_to_ptr.vmem [resolvable:$true] %s1569_s28 }
  0x31   :  { %p2026_p3 = scmp.lt.s32.totalorder %s1570_s28, %s1570_s28 }
  0x32   :  { %253 = vmatpush1.bf16.msra.mxu0 %v2137_v6  ;;  %v2276_v27 = vrot.slane %v85_v25, %v107_v24  ;;  %v112_v28 = vrot.slane %v85_v25, %v111_v26  ;;  %v2350_v26 = vld [vmem:[%s2960_s1] sm:$0xff] }
  0x33   :  { %254 = vmatprep.subr.bf16.mxu0 %v2140_v7 }
  0x36   :  { %255 = vmatpush1.bf16.msra.mxu0 %v2143_v8 }
  0x37   :  { %256 = vmatprep.subr.bf16.mxu0 %v2145_v9 }
  0x3a   :  { %257 = vmatpush1.bf16.msra.mxu0 %v2148_v10 }
  0x3b   :  { %258 = vmatprep.subr.bf16.mxu0 %v2150_v11 }
  0x3e   :  { %259 = vmatpush1.bf16.msra.mxu0 %v2154_v12 }
  0x3f   :  { %260 = vmatprep.subr.bf16.mxu0 %v2156_v13 }
  0x42   :  { %261 = vmatpush1.bf16.msra.mxu0 %v2161_v14 }
  0x43   :  { %262 = vmatprep.subr.bf16.mxu0 %v2164_v15 }
  0x46   :  { %263 = vmatpush1.bf16.msra.mxu0 %v2167_v16 }
  0x47   :  { %331 = vmatprep.subr.bf16.mxu0 %v2123_v1 }
  0x49   :  { %281 = vmatmul.mubr.bf16.vlgmr.msra.gmra.mrb[0].mxu0 %v2174_v17 }
  0x4a   :  { %332 = vmatpush1.bf16.msra.mxu0 %v2125_v2  ;;  %363 = vmatprep.mubr.bf16.mxu0 %v2055_v0 }
  0x4b   :  { %333 = vmatprep.subr.bf16.mxu0 %v2128_v3 }
  0x4e   :  { %334 = vmatpush1.bf16.msra.mxu0 %v2131_v4 }
  0x4f   :  { %335 = vmatprep.subr.bf16.mxu0 %v2134_v5 }
  0x52   :  { %336 = vmatpush1.bf16.msra.mxu0 %v2137_v6 }
  0x53   :  { %337 = vmatprep.subr.bf16.mxu0 %v2140_v7 }
  0x56   :  { %338 = vmatpush1.bf16.msra.mxu0 %v2143_v8 }
  0x57   :  { %339 = vmatprep.subr.bf16.mxu0 %v2145_v9 }
  0x5a   :  { %340 = vmatpush1.bf16.msra.mxu0 %v2148_v10 }
  0x5b   :  { %341 = vmatprep.subr.bf16.mxu0 %v2150_v11 }
  0x5e   :  { %342 = vmatpush1.bf16.msra.mxu0 %v2154_v12 }
  0x5f   :  { %343 = vmatprep.subr.bf16.mxu0 %v2156_v13 }
  0x62   :  { %344 = vmatpush1.bf16.msra.mxu0 %v2161_v14 }
  0x63   :  { %345 = vmatprep.subr.bf16.mxu0 %v2164_v15 }
  0x66   :  { %346 = vmatpush1.bf16.msra.mxu0 %v2167_v16 }
  0x67   :  { %414 = vmatprep.subr.bf16.mxu0 %v2123_v1 }
  0x69   :  { %364 = vmatmul.mubr.bf16.vlgmr.msra.gmra.mrb[4].mxu0 %v2197_v18 }
  0x6a   :  { %415 = vmatpush1.bf16.msra.mxu0 %v2125_v2  ;;  %446 = vmatprep.mubr.bf16.mxu0 %v2055_v0 }
  0x6b   :  { %416 = vmatprep.subr.bf16.mxu0 %v2128_v3 }
  0x6e   :  { %417 = vmatpush1.bf16.msra.mxu0 %v2131_v4 }
  0x6f   :  { %418 = vmatprep.subr.bf16.mxu0 %v2134_v5 }
  0x72   :  { %419 = vmatpush1.bf16.msra.mxu0 %v2137_v6 }
  0x73   :  { %420 = vmatprep.subr.bf16.mxu0 %v2140_v7 }
  0x76   :  { %421 = vmatpush1.bf16.msra.mxu0 %v2143_v8 }
  0x77   :  { %422 = vmatprep.subr.bf16.mxu0 %v2145_v9 }
  0x7a   :  { %423 = vmatpush1.bf16.msra.mxu0 %v2148_v10 }
  0x7b   :  { %424 = vmatprep.subr.bf16.mxu0 %v2150_v11 }
  0x7e   :  { %425 = vmatpush1.bf16.msra.mxu0 %v2154_v12 }
  0x7f   :  { %426 = vmatprep.subr.bf16.mxu0 %v2156_v13 }
  0x82   :  { %427 = vmatpush1.bf16.msra.mxu0 %v2161_v14 }
  0x83   :  { %428 = vmatprep.subr.bf16.mxu0 %v2164_v15 }
  0x86   :  { %429 = vmatpush1.bf16.msra.mxu0 %v2167_v16 }
  0x87   :  { %497 = vmatprep.subr.bf16.mxu0 %v2123_v1 }
  0x89   :  { %447 = vmatmul.mubr.bf16.vlgmr.msra.gmra.mrb[8].mxu0 %v2220_v19 }
  0x8a   :  { %498 = vmatpush1.bf16.msra.mxu0 %v2125_v2  ;;  %529 = vmatprep.mubr.bf16.mxu0 %v2055_v0 }
  0x8b   :  { %499 = vmatprep.subr.bf16.mxu0 %v2128_v3 }
  0x8e   :  { %500 = vmatpush1.bf16.msra.mxu0 %v2131_v4 }
  0x8f   :  { %501 = vmatprep.subr.bf16.mxu0 %v2134_v5 }
  0x92   :  { %502 = vmatpush1.bf16.msra.mxu0 %v2137_v6 }
  0x93   :  { %503 = vmatprep.subr.bf16.mxu0 %v2140_v7 }
  0x96   :  { %504 = vmatpush1.bf16.msra.mxu0 %v2143_v8 }
  0x97   :  { %505 = vmatprep.subr.bf16.mxu0 %v2145_v9 }
  0x9a   :  { %506 = vmatpush1.bf16.msra.mxu0 %v2148_v10 }
  0x9b   :  { %507 = vmatprep.subr.bf16.mxu0 %v2150_v11 }
  0x9e   :  { %508 = vmatpush1.bf16.msra.mxu0 %v2154_v12 }
  0x9f   :  { %509 = vmatprep.subr.bf16.mxu0 %v2156_v13 }
  0xa2   :  { %510 = vmatpush1.bf16.msra.mxu0 %v2161_v14 }
  0xa3   :  { %511 = vmatprep.subr.bf16.mxu0 %v2164_v15 }
  0xa6   :  { %512 = vmatpush1.bf16.msra.mxu0 %v2167_v16 }
  0xa7   :  { %580 = vmatprep.subr.bf16.mxu0 %v2123_v1 }
  0xa9   :  { %530 = vmatmul.mubr.bf16.vlgmr.msra.gmra.mrb[12].mxu0 %v2243_v20 }
  0xaa   :  { %581 = vmatpush1.bf16.msra.mxu0 %v2125_v2  ;;  %612 = vmatprep.mubr.bf16.mxu0 %v2055_v0 }
  0xab   :  { %582 = vmatprep.subr.bf16.mxu0 %v2128_v3 }
  0xae   :  { %583 = vmatpush1.bf16.msra.mxu0 %v2131_v4 }
  0xaf   :  { %584 = vmatprep.subr.bf16.mxu0 %v2134_v5 }
  0xb2   :  { %585 = vmatpush1.bf16.msra.mxu0 %v2137_v6 }
  0xb3   :  { %586 = vmatprep.subr.bf16.mxu0 %v2140_v7 }
  0xb6   :  { %587 = vmatpush1.bf16.msra.mxu0 %v2143_v8 }
  0xb7   :  { %588 = vmatprep.subr.bf16.mxu0 %v2145_v9 }
  0xba   :  { %589 = vmatpush1.bf16.msra.mxu0 %v2148_v10 }
  0xbb   :  { %590 = vmatprep.subr.bf16.mxu0 %v2150_v11 }
  0xbe   :  { %591 = vmatpush1.bf16.msra.mxu0 %v2154_v12 }
  0xbf   :  { %592 = vmatprep.subr.bf16.mxu0 %v2156_v13 }
  0xc2   :  { %593 = vmatpush1.bf16.msra.mxu0 %v2161_v14 }
  0xc3   :  { %594 = vmatprep.subr.bf16.mxu0 %v2164_v15 }
  0xc6   :  { %595 = vmatpush1.bf16.msra.mxu0 %v2167_v16 }
  0xc9   :  { %613 = vmatmul.mubr.bf16.vlgmr.msra.gmra.mrb[16].mxu0 %v2266_v21 }
 0x11c   :  { %v282_v29 = vpop.f32.mrb[0].mxu0 }
 0x11d   :  { %v2279_v30 = vadd.f32 %v282_v29, %v2276_v27  ;;  %v284_v31 = vpop.f32.mrb[1].mxu0 }
 0x11e   :  { %v2281_v32 = vadd.f32 %v284_v31, %v112_v28  ;;  %v286_v33 = vpop.f32.mrb[2].mxu0 }
 0x11f   :  { %v287_v34 = vpop.f32.mrb[3].mxu0 }
 0x120   :  { %v670_v35 = vmul.f32 %v2281_v32, %v2279_v30 }
 0x122   :  { %1008 = vrot.lane.b32.xlu1 %v670_v35, %s2053_s2  ;;  %v672_v36 = vsel %vm671_vm0, %v670_v35, 0.0 }
 0x123   :  { %673 = vadd.xlane.f32.xlu0 %v672_v36 }
 0x13c   :  { %v365_v37 = vpop.f32.mrb[4].mxu0 }
 0x13d   :  { %v2288_v38 = vadd.f32 %v365_v37, %v2276_v27  ;;  %v367_v39 = vpop.f32.mrb[5].mxu0 }
 0x13e   :  { %v2290_v40 = vadd.f32 %v367_v39, %v112_v28  ;;  %v369_v41 = vpop.f32.mrb[6].mxu0 }
 0x13f   :  { %v370_v42 = vpop.f32.mrb[7].mxu0  ;;  %v731_v43 = vmul.f32 %v2288_v38, %v2281_v32 }
 0x140   :  { %v676_v44 = vmul.f32 %v2290_v40, %v2279_v30  ;;  %v736_v50 = vmul.f32 %v2290_v40, %v2288_v38 }
 0x141   :  { %1083 = vrot.lane.b32.xlu1 %v731_v43, %s2053_s2  ;;  %v732_v51 = vsel %vm671_vm0, %v731_v43, 0.0 }
 0x142   :  { %1016 = vrot.lane.b32.xlu0 %v676_v44, %s2053_s2  ;;  %v677_v49 = vsel %vm671_vm0, %v676_v44, 0.0  ;;  %v737_v52 = vsel %vm671_vm0, %v736_v50, 0.0 }
 0x15c   :  { %v448_v45 = vpop.f32.mrb[8].mxu0 }
 0x15d   :  { %v450_v46 = vpop.f32.mrb[9].mxu0  ;;  %v2304_v53 = vadd.f32 %v448_v45, %v2276_v27 }
 0x15e   :  { %v452_v47 = vpop.f32.mrb[10].mxu0  ;;  %v2313_v57 = vadd.f32 %v450_v46, %v112_v28 }
 0x15f   :  { %v453_v48 = vpop.f32.mrb[11].mxu0  ;;  %v796_v54 = vmul.f32 %v2304_v53, %v2290_v40  ;;  %v791_v55 = vmul.f32 %v2304_v53, %v2281_v32 }
 0x160   :  { %v801_v2 = vmul.f32 %v2313_v57, %v2304_v53  ;;  %v681_v11 = vmul.f32 %v2313_v57, %v2279_v30  ;;  %v741_v12 = vmul.f32 %v2313_v57, %v2288_v38 }
 0x161   :  { %678 = vadd.xlane.f32.xlu0 %v677_v49  ;;  %v792_v1 = vsel %vm671_vm0, %v791_v55, 0.0  ;;  %v797_v5 = vsel %vm671_vm0, %v796_v54, 0.0 }
 0x162   :  { %v802_v6 = vsel %vm671_vm0, %v801_v2, 0.0  ;;  %v682_v15 = vsel %vm671_vm0, %v681_v11, 0.0  ;;  %v742_v16 = vsel %vm671_vm0, %v741_v12, 0.0 }
 0x165   :  { %733 = vadd.xlane.f32.xlu1 %v732_v51  ;;  %738 = vadd.xlane.f32.xlu0 %v737_v52 }
 0x176   :  { %1091 = vrot.lane.b32.xlu1 %v736_v50, %s2053_s2 }
 0x17a   :  { %1166 = vrot.lane.b32.xlu1 %v796_v54, %s2053_s2 }
 0x17b   :  { %1158 = vrot.lane.b32.xlu0 %v791_v55, %s2053_s2 }
 0x17c   :  { %v531_v56 = vpop.f32.mrb[12].mxu0 }
 0x17d   :  { %v532_v58 = vadd.f32 %v531_v56, %v2276_v27  ;;  %v533_v59 = vpop.f32.mrb[13].mxu0 }
 0x17e   :  { %v2316_v60 = vadd.f32 %v533_v59, %v112_v28  ;;  %v535_v61 = vpop.f32.mrb[14].mxu0 }
 0x17f   :  { %v536_v62 = vpop.f32.mrb[15].mxu0  ;;  %v861_v63 = vmul.f32 %v532_v58, %v2313_v57  ;;  %v856_v13 = vmul.f32 %v532_v58, %v2290_v40  ;;  %v851_v33 = vmul.f32 %v532_v58, %v2281_v32 }
 0x180   :  { %v866_v0 = vmul.f32 %v2316_v60, %v532_v58  ;;  %v746_v44 = vmul.f32 %v2316_v60, %v2288_v38 }
 0x181   :  { %v857_v14 = vsel %vm671_vm0, %v856_v13, 0.0  ;;  %v852_v47 = vsel %vm671_vm0, %v851_v33, 0.0  ;;  %v862_v48 = vsel %vm671_vm0, %v861_v63, 0.0 }
 0x182   :  { %v747_v45 = vsel %vm671_vm0, %v746_v44, 0.0  ;;  %v867_v46 = vsel %vm671_vm0, %v866_v0, 0.0 }
 0x194   :  { %v2343_v24 = vpop.permute.xlu1 %1008 }
 0x19a   :  { %793 = vadd.xlane.f32.xlu0 %v792_v1  ;;  %v2056_v1 = vmov 0.0  }
 0x19b   :  { %1677 = vmatprep.subr.bf16.mxu1 %v2056_v1  ;;  %1777 = vmatprep.subr.bf16.mxu0 %v2056_v1 }
 0x19c   :  { %v614_v3 = vpop.f32.mrb[16].mxu0  ;;  %1693 = vmatprep.mubr.msk.bf16.mxu1 %vm2057_vm1, %v2056_v1  ;;  %1785 = vmatprep.mubr.msk.bf16.mxu0 %vm2057_vm1, %v2056_v1 }
 0x19d   :  { %v616_v4 = vpop.f32.mrb[17].mxu0  ;;  %v2385_v49 = vadd.f32 %v614_v3, %v2276_v27  ;;  %v2402_v27 = vld [vmem:[%s2960_s1 + $0x10] sm:$0xff]  ;;  %v806_v3 = vmul.f32 %v2316_v60, %v2304_v53 }
 0x19e   :  { %v2325_v7 = vadd.f32 %v616_v4, %v112_v28  ;;  %798 = vadd.xlane.f32.xlu1 %v797_v5  ;;  %803 = vadd.xlane.f32.xlu0 %v802_v6  ;;  %v618_v8 = vpop.f32.mrb[18].mxu0  ;;  %v2355_v28 = vld [vmem:[%s2960_s1 + $0x8] sm:$0xff]  ;;  %v2435_v5 = vld [vmem:[#allocation2 + $0x38] ss:$12 sps:$4 sm:$0xff]   ;;  %v2438_v6 = vld [vmem:[#allocation2 + $0x50] ss:$12 sps:$4 sm:$0xff]  }
 0x19f   :  { %v619_v9 = vpop.f32.mrb[19].mxu0  ;;  %v2389_v50 = vmul.f32 %v2385_v49, %v2290_v40  ;;  %v686_v40 = vmul.f32 %v2316_v60, %v2279_v30  ;;  %v2430_v4 = vld [vmem:[#allocation2 + $0x20] ss:$12 sps:$4 sm:$0xff]   ;;  %v911_v8 = vmul.f32 %v2385_v49, %v2281_v32 }
 0x1a0   :  { %v2328_v10 = vmul.f32 %v2325_v7, %v532_v58  ;;  %v2444_v9 = vld [vmem:[#allocation2 + $0x68] ss:$12 sps:$4 sm:$0xff]  }
 0x1af   :  { %1024 = vrot.lane.b32.xlu1 %v681_v11, %s2053_s2  ;;  %v912_v11 = vsel %vm671_vm0, %v911_v8, 0.0 }
 0x1b0   :  { %v674_v22 = vpop.xlane.xlu0 %673 }
 0x1b1   :  { %v2361_v34 = vadd.f32 %v674_v22, %v2350_v26  ;;  %v2481_v22 = vmul.f32 %v2325_v7, %v2288_v38  ;;  %v931_v38 = vmul.f32 %v2325_v7, %v2385_v49 }
 0x1b3   :  { %1099 = vrot.lane.b32.xlu1 %v741_v12, %s2053_s2  ;;  %v2357_v29 = vpop.permute.xlu1 %1083  ;;  %v921_v12 = vmul.f32 %v2385_v49, %v2313_v57 }
 0x1b4   :  { %1249 = vrot.lane.b32.xlu0 %v861_v63, %s2053_s2  ;;  %v2345_v25 = vpop.permute.xlu0 %1016 }
 0x1b5   :  { %v922_v32 = vsel %vm671_vm0, %v921_v12, 0.0 }
 0x1b7   :  { %1174 = vrot.lane.b32.xlu1 %v801_v2, %s2053_s2  ;;  %v2422_v2 = vld [vmem:[#allocation2 + $0x8] ss:$12 sps:$4 sm:$0xff]  }
 0x1b8   :  { %1678 = vmatpush3.bf16.msra.mxu1 %v2422_v2 }
 0x1b9   :  { %1679 = vmatprep.subr.bf16.mxu1 %v2056_v1 }
 0x1bc   :  { %1680 = vmatpush3.bf16.msra.mxu1 %v2430_v4 }
 0x1bd   :  { %1681 = vmatprep.subr.bf16.mxu1 %v2056_v1 }
 0x1c0   :  { %1682 = vmatpush3.bf16.msra.mxu1 %v2435_v5 }
 0x1c1   :  { %1683 = vmatprep.subr.bf16.mxu1 %v2056_v1 }
 0x1c4   :  { %1684 = vmatpush3.bf16.msra.mxu1 %v2438_v6 }
 0x1c5   :  { %1685 = vmatprep.subr.bf16.mxu1 %v2056_v1 }
 0x1c8   :  { %1686 = vmatpush3.bf16.msra.mxu1 %v2444_v9 }
 0x1c9   :  { %1687 = vmatprep.subr.bf16.mxu1 %v2056_v1 }
 0x1d3   :  { %858 = vadd.xlane.f32.xlu0 %v857_v14  ;;  %v2456_v14 = vld [vmem:[#allocation2 + $0x98] ss:$12 sps:$4 sm:$0xff]  }
 0x1db   :  { %683 = vadd.xlane.f32.xlu1 %v682_v15  ;;  %v2460_v15 = vld [vmem:[#allocation2 + $0xb0] ss:$12 sps:$4 sm:$0xff]  }
 0x1df   :  { %743 = vadd.xlane.f32.xlu1 %v742_v16  ;;  %v687_v16 = vsel %vm671_vm0, %v686_v40, 0.0 }
 0x1e9   :  { %1257 = vrot.lane.b32.xlu0 %v866_v0, %s2053_s2 }
 0x1ee   :  { %v679_v31 = vpop.xlane.xlu0 %678 }
 0x1ef   :  { %v2364_v35 = vadd.f32 %v2355_v28, %v679_v31 }
 0x1f0   :  { %1233 = vrot.lane.b32.xlu1 %v851_v33, %s2053_s2  ;;  %v1011_v33 = vsel %vm671_vm0, %v2343_v24, 0.0 }
 0x1f1   :  { %v696_v36 = vmax.f32 %v2361_v34, %v2364_v35 }
 0x1f2   :  { %v734_v37 = vpop.xlane.xlu1 %733  ;;  %v739_v39 = vpop.xlane.xlu0 %738 }
 0x1f3   :  { %v2370_v41 = vadd.f32 %v734_v37, %v2350_v26  ;;  %v2373_v42 = vadd.f32 %v2355_v28, %v739_v39 }
 0x1f4   :  { %1241 = vrot.lane.b32.xlu1 %v856_v13, %s2053_s2  ;;  %v2451_v13 = vld [vmem:[#allocation2 + $0x80] ss:$12 sps:$4 sm:$0xff]  }
 0x1f5   :  { %v756_v43 = vmax.f32 %v2370_v41, %v2373_v42  ;;  %1688 = vmatpush3.bf16.msra.mxu1 %v2451_v13 }
 0x1f6   :  { %v2391_v51 = vpop.permute.xlu1 %1091  ;;  %v2395_v52 = vpop.permute.xlu0 %1158  ;;  %1689 = vmatprep.subr.bf16.mxu1 %v2056_v1 }
 0x1f9   :  { %1690 = vmatpush3.bf16.msra.mxu1 %v2456_v14 }
 0x1fa   :  { %v2397_v54 = vpop.permute.xlu1 %1166  ;;  %1691 = vmatprep.subr.bf16.mxu1 %v2056_v1 }
 0x1fd   :  { %1692 = vmatpush3.bf16.msra.mxu1 %v2460_v15 }
 0x1fe   :  { %1697 = vmatprep.subr.bf16.mxu1 %v2056_v1 }
 0x200   :  { %1694 = vmatmul.mubr.bf16.vlgmr.msra.gmra.mrb[0].mxu1 %v2174_v17  ;;  %v807_v17 = vsel %vm671_vm0, %v806_v3, 0.0 }
 0x201   :  { %1698 = vmatpush3.bf16.msra.mxu1 %v2422_v2  ;;  %1713 = vmatprep.mubr.msk.bf16.mxu1 %vm2057_vm1, %v2056_v1 }
 0x202   :  { %1699 = vmatprep.subr.bf16.mxu1 %v2056_v1 }
 0x205   :  { %1700 = vmatpush3.bf16.msra.mxu1 %v2430_v4 }
 0x206   :  { %1701 = vmatprep.subr.bf16.mxu1 %v2056_v1 }
 0x208   :  { %748 = vadd.xlane.f32.xlu0 %v747_v45 }
 0x209   :  { %1702 = vmatpush3.bf16.msra.mxu1 %v2435_v5 }
 0x20a   :  { %1703 = vmatprep.subr.bf16.mxu1 %v2056_v1 }
 0x20c   :  { %868 = vadd.xlane.f32.xlu0 %v867_v46 }
 0x20d   :  { %1704 = vmatpush3.bf16.msra.mxu1 %v2438_v6 }
 0x20e   :  { %1705 = vmatprep.subr.bf16.mxu1 %v2056_v1 }
 0x211   :  { %1706 = vmatpush3.bf16.msra.mxu1 %v2444_v9 }
 0x212   :  { %1707 = vmatprep.subr.bf16.mxu1 %v2056_v1 }
 0x215   :  { %1708 = vmatpush3.bf16.msra.mxu1 %v2451_v13 }
 0x216   :  { %1709 = vmatprep.subr.bf16.mxu1 %v2056_v1 }
 0x218   :  { %853 = vadd.xlane.f32.xlu1 %v852_v47 }
 0x219   :  { %1710 = vmatpush3.bf16.msra.mxu1 %v2456_v14 }
 0x21a   :  { %1711 = vmatprep.subr.bf16.mxu1 %v2056_v1 }
 0x21c   :  { %863 = vadd.xlane.f32.xlu1 %v862_v48 }
 0x21d   :  { %1712 = vmatpush3.bf16.msra.mxu1 %v2460_v15 }
 0x21e   :  { %1717 = vmatprep.subr.bf16.mxu1 %v2056_v1 }
 0x220   :  { %1714 = vmatmul.mubr.bf16.vlgmr.msra.gmra.mrb[4].mxu1 %v2197_v18  ;;  %v2540_v18 = vmul.f32 %v2325_v7, %v2279_v30 }
 0x221   :  { %1718 = vmatpush3.bf16.msra.mxu1 %v2422_v2  ;;  %1733 = vmatprep.mubr.msk.bf16.mxu1 %vm2057_vm1, %v2056_v1 }
 0x222   :  { %1316 = vrot.lane.b32.xlu0 %v2389_v50, %s2053_s2  ;;  %1719 = vmatprep.subr.bf16.mxu1 %v2056_v1 }
 0x225   :  { %1720 = vmatpush3.bf16.msra.mxu1 %v2430_v4 }
 0x226   :  { %1721 = vmatprep.subr.bf16.mxu1 %v2056_v1 }
 0x227   :  { %v794_v55 = vpop.xlane.xlu0 %793 }
 0x228   :  { %v2407_v59 = vadd.f32 %v794_v55, %v2350_v26  ;;  %v932_v55 = vsel %vm671_vm0, %v931_v38, 0.0 }
 0x229   :  { %1722 = vmatpush3.bf16.msra.mxu1 %v2435_v5 }
 0x22a   :  { %1723 = vmatprep.subr.bf16.mxu1 %v2056_v1 }
 0x22b   :  { %v799_v56 = vpop.xlane.xlu1 %798  ;;  %v804_v58 = vpop.xlane.xlu0 %803 }
 0x22c   :  { %v2410_v61 = vadd.f32 %v2355_v28, %v799_v56  ;;  %v2416_v63 = vadd.f32 %v2402_v27, %v804_v58  ;;  %v1019_v58 = vsel %vm671_vm0, %v2345_v25, 0.0 }
 0x22d   :  { %1032 = vrot.lane.b32.xlu1 %v686_v40, %s2053_s2  ;;  %1724 = vmatpush3.bf16.msra.mxu1 %v2438_v6  ;;  %v2574_v40 = vld [vmem:[%s2960_s1 + $0x18] sm:$0xff] }
 0x22e   :  { %v816_v62 = vmax.f32 %v2407_v59, %v2410_v61  ;;  %1725 = vmatprep.subr.bf16.mxu1 %v2056_v1 }
 0x22f   :  { %v2476_v57 = vpop.permute.xlu1 %1024  ;;  %v2555_v48 = vpop.permute.xlu0 %1249 }
 0x230   :  { %v2419_v0 = vmax.f32 %v816_v62, %v2416_v63  ;;  %v1094_v62 = vsel %vm671_vm0, %v2391_v51, 0.0  ;;  %v926_v51 = vmul.f32 %v2385_v49, %v2316_v60  ;;  %v1027_v49 = vsel %vm671_vm0, %v2476_v57, 0.0 }
 0x231   :  { %1107 = vrot.lane.b32.xlu1 %v746_v44, %s2053_s2  ;;  %1726 = vmatpush3.bf16.msra.mxu1 %v2444_v9 }
 0x232   :  { %1727 = vmatprep.subr.bf16.mxu1 %v2056_v1 }
 0x233   :  { %v2488_v31 = vpop.permute.xlu1 %1099 }
 0x235   :  { %1182 = vrot.lane.b32.xlu1 %v806_v3, %s2053_s2  ;;  %1728 = vmatpush3.bf16.msra.mxu1 %v2451_v13  ;;  %v917_v3 = vsel %vm671_vm0, %v2389_v50, 0.0 }
 0x236   :  { %1729 = vmatprep.subr.bf16.mxu1 %v2056_v1 }
 0x237   :  { %v2501_v37 = vpop.permute.xlu1 %1174 }
 0x239   :  { %1730 = vmatpush3.bf16.msra.mxu1 %v2456_v14 }
 0x23a   :  { %1731 = vmatprep.subr.bf16.mxu1 %v2056_v1 }
 0x23d   :  { %1732 = vmatpush3.bf16.msra.mxu1 %v2460_v15 }
 0x23e   :  { %1737 = vmatprep.subr.bf16.mxu1 %v2056_v1 }
 0x240   :  { %1734 = vmatmul.mubr.bf16.vlgmr.msra.gmra.mrb[8].mxu1 %v2220_v19 }
 0x241   :  { %913 = vadd.xlane.f32.xlu0 %v912_v11  ;;  %1738 = vmatpush3.bf16.msra.mxu1 %v2422_v2 }
 0x242   :  { %1739 = vmatprep.subr.bf16.mxu1 %v2056_v1  ;;  %1753 = vmatprep.mubr.msk.bf16.mxu1 %vm2057_vm1, %v2056_v1 }
 0x245   :  { %923 = vadd.xlane.f32.xlu0 %v922_v32  ;;  %1740 = vmatpush3.bf16.msra.mxu1 %v2430_v4  ;;  %v1169_v32 = vsel %vm671_vm0, %v2397_v54, 0.0 }
 0x246   :  { %1741 = vmatprep.subr.bf16.mxu1 %v2056_v1 }
 0x249   :  { %1742 = vmatpush3.bf16.msra.mxu1 %v2435_v5 }
 0x24a   :  { %1743 = vmatprep.subr.bf16.mxu1 %v2056_v1 }
 0x24d   :  { %1744 = vmatpush3.bf16.msra.mxu1 %v2438_v6 }
 0x24e   :  { %1745 = vmatprep.subr.bf16.mxu1 %v2056_v1 }
 0x251   :  { %1746 = vmatpush3.bf16.msra.mxu1 %v2444_v9 }
 0x252   :  { %1747 = vmatprep.subr.bf16.mxu1 %v2056_v1 }
 0x255   :  { %1748 = vmatpush3.bf16.msra.mxu1 %v2451_v13 }
 0x256   :  { %1749 = vmatprep.subr.bf16.mxu1 %v2056_v1 }
 0x259   :  { %688 = vadd.xlane.f32.xlu1 %v687_v16  ;;  %1750 = vmatpush3.bf16.msra.mxu1 %v2456_v14 }
 0x25a   :  { %1751 = vmatprep.subr.bf16.mxu1 %v2056_v1 }
 0x25b   :  { %1115 = vrot.lane.b32.xlu0 %v2481_v22, %s2053_s2 }
 0x25d   :  { %808 = vadd.xlane.f32.xlu1 %v807_v17  ;;  %1752 = vmatpush3.bf16.msra.mxu1 %v2460_v15 }
 0x25e   :  { %1757 = vmatprep.subr.bf16.mxu1 %v2056_v1 }
 0x25f   :  { %1265 = vrot.lane.b32.xlu0 %v2328_v10, %s2053_s2 }
 0x260   :  { %1754 = vmatmul.mubr.bf16.vlgmr.msra.gmra.mrb[12].mxu1 %v2243_v20  ;;  %v752_v20 = vsel %vm671_vm0, %v2481_v22, 0.0 }
 0x261   :  { %1012 = vadd.xlane.f32.xlu1 %v1011_v33  ;;  %1758 = vmatpush3.bf16.msra.mxu1 %v2422_v2  ;;  %v872_v2 = vsel %vm671_vm0, %v2328_v10, 0.0  ;;  %v1252_v10 = vsel %vm671_vm0, %v2555_v48, 0.0 }
 0x262   :  { %1773 = vmatprep.mubr.msk.bf16.mxu1 %vm2057_vm1, %v2056_v1  ;;  %1759 = vmatprep.subr.bf16.mxu1 %v2056_v1 }
 0x263   :  { %1340 = vrot.lane.b32.xlu0 %v931_v38, %s2053_s2 }
 0x265   :  { %1760 = vmatpush3.bf16.msra.mxu1 %v2430_v4  ;;  %v1102_v4 = vsel %vm671_vm0, %v2488_v31, 0.0 }
 0x266   :  { %1761 = vmatprep.subr.bf16.mxu1 %v2056_v1 }
 0x268   :  { %v684_v39 = vpop.xlane.xlu1 %683 }
 0x269   :  { %v2506_v44 = vadd.f32 %v2402_v27, %v684_v39  ;;  %1762 = vmatpush3.bf16.msra.mxu1 %v2435_v5 }
 0x26a   :  { %1763 = vmatprep.subr.bf16.mxu1 %v2056_v1 }
 0x26b   :  { %v2513_v24 = vmax.f32 %v696_v36, %v2506_v44  ;;  %v692_v36 = vsel %vm671_vm0, %v2540_v18, 0.0 }
 0x26c   :  { %v744_v45 = vpop.xlane.xlu1 %743 }
 0x26d   :  { %v2517_v46 = vadd.f32 %v2402_v27, %v744_v45  ;;  %1764 = vmatpush3.bf16.msra.mxu1 %v2438_v6 }
 0x26e   :  { %1765 = vmatprep.subr.bf16.mxu1 %v2056_v1 }
 0x26f   :  { %v2524_v47 = vmax.f32 %v756_v43, %v2517_v46  ;;  %v2548_v43 = vmul.f32 %v2325_v7, %v2304_v53  ;;  %v859_v53 = vpop.xlane.xlu0 %858  ;;  %v1086_v7 = vsel %vm671_vm0, %v2357_v29, 0.0 }
 0x270   :  { %v2594_v11 = vpop.permute.xlu1 %1233  ;;  %v2610_v54 = vadd.f32 %v2355_v28, %v859_v53 }
 0x271   :  { %v812_v30 = vsel %vm671_vm0, %v2548_v43, 0.0  ;;  %1766 = vmatpush3.bf16.msra.mxu1 %v2444_v9 }
 0x272   :  { %1308 = vrot.lane.b32.xlu1 %v911_v8, %s2053_s2  ;;  %v1161_v8 = vsel %vm671_vm0, %v2395_v52, 0.0  ;;  %v1177_v52 = vsel %vm671_vm0, %v2501_v37, 0.0  ;;  %1767 = vmatprep.subr.bf16.mxu1 %v2056_v1 }
 0x273   :  { %v2565_v56 = vpop.permute.xlu0 %1257 }
 0x274   :  { %v1242_v60 = vpop.permute.xlu1 %1241 }
 0x275   :  { %v1244_v33 = vsel %vm671_vm0, %v1242_v60, 0.0  ;;  %1768 = vmatpush3.bf16.msra.mxu1 %v2451_v13 }
 0x276   :  { %1324 = vrot.lane.b32.xlu1 %v921_v12, %s2053_s2  ;;  %v927_v12 = vsel %vm671_vm0, %v926_v51, 0.0  ;;  %1769 = vmatprep.subr.bf16.mxu1 %v2056_v1 }
 0x279   :  { %1770 = vmatpush3.bf16.msra.mxu1 %v2456_v14 }
 0x27a   :  { %1771 = vmatprep.subr.bf16.mxu1 %v2056_v1 }
 0x27d   :  { %1772 = vmatpush3.bf16.msra.mxu1 %v2460_v15 }
 0x27e   :  { %1789 = vmatprep.subr.bf16.mxu1 %v2056_v1 }
 0x280   :  { %1774 = vmatmul.mubr.bf16.vlgmr.msra.gmra.mrb[16].mxu1 %v2266_v21  ;;  %v1236_v21 = vsel %vm671_vm0, %v2594_v11, 0.0 }
 0x281   :  { %1797 = vmatprep.mubr.msk.bf16.mxu1 %vm2057_vm1, %v2056_v1 }
 0x282   :  { %693 = vadd.xlane.f32.xlu0 %v692_v36 }
 0x286   :  { %813 = vadd.xlane.f32.xlu0 %v812_v30 }
 0x28a   :  { %933 = vadd.xlane.f32.xlu0 %v932_v55 }
 0x28e   :  { %1087 = vadd.xlane.f32.xlu0 %v1086_v7 }
 0x292   :  { %1020 = vadd.xlane.f32.xlu0 %v1019_v58 }
 0x295   :  { %v749_v29 = vpop.xlane.xlu0 %748 }
 0x296   :  { %v2582_v25 = vadd.f32 %v2574_v40, %v749_v29  ;;  %1095 = vadd.xlane.f32.xlu0 %v1094_v62 }
 0x298   :  { %v758_v19 = vmax.f32 %v2524_v47, %v2582_v25 }
 0x299   :  { %v869_v17 = vpop.xlane.xlu0 %868 }
 0x29a   :  { %918 = vadd.xlane.f32.xlu1 %v917_v3  ;;  %1162 = vadd.xlane.f32.xlu0 %v1161_v8  ;;  %v2625_v39 = vadd.f32 %v2574_v40, %v869_v17 }
 0x29d   :  { %v1317_v5 = vpop.permute.xlu0 %1316 }
 0x29e   :  { %928 = vadd.xlane.f32.xlu1 %v927_v12  ;;  %1170 = vadd.xlane.f32.xlu0 %v1169_v32 }
 0x2a2   :  { %1028 = vadd.xlane.f32.xlu0 %v1027_v49  ;;  %v2696_v49 = vld [vmem:[%s2960_s1 + $0x20] sm:$0xff] }
 0x2a5   :  { %v854_v50 = vpop.xlane.xlu1 %853 }
 0x2a6   :  { %v2613_v16 = vadd.f32 %v854_v50, %v2350_v26  ;;  %1178 = vadd.xlane.f32.xlu0 %v1177_v52 }
 0x2a8   :  { %v876_v57 = vmax.f32 %v2613_v16, %v2610_v54 }
 0x2a9   :  { %v864_v38 = vpop.xlane.xlu1 %863 }
 0x2aa   :  { %v2621_v37 = vadd.f32 %v2402_v27, %v864_v38  ;;  %1245 = vadd.xlane.f32.xlu0 %v1244_v33 }
 0x2ac   :  { %v2628_v45 = vmax.f32 %v876_v57, %v2621_v37 }
 0x2ad   :  { %v1033_v36 = vpop.permute.xlu1 %1032 }
 0x2ae   :  { %v1035_v30 = vsel %vm671_vm0, %v1033_v36, 0.0  ;;  %v878_v55 = vmax.f32 %v2628_v45, %v2625_v39 }
 0x2af   :  { %1040 = vrot.lane.b32.xlu1 %v2540_v18, %s2053_s2  ;;  %1036 = vadd.xlane.f32.xlu0 %v1035_v30 }
 0x2b1   :  { %v1108_v53 = vpop.permute.xlu1 %1107 }
 0x2b2   :  { %v1110_v58 = vsel %vm671_vm0, %v1108_v53, 0.0 }
 0x2b3   :  { %1190 = vrot.lane.b32.xlu1 %v2548_v43, %s2053_s2 }
 0x2b5   :  { %v1183_v7 = vpop.permute.xlu1 %1182 }
 0x2b6   :  { %v1185_v18 = vsel %vm671_vm0, %v1183_v7, 0.0 }
 0x2b7   :  { %1332 = vrot.lane.b32.xlu1 %v926_v51, %s2053_s2  ;;  %1186 = vadd.xlane.f32.xlu0 %v1185_v18  ;;  %v1319_v51 = vsel %vm671_vm0, %v1317_v5, 0.0 }
 0x2ce   :  { %v2673_v13 = vpop.xlane.xlu0 %913 }
 0x2d2   :  { %v2683_v29 = vpop.xlane.xlu0 %923 }
 0x2d6   :  { %v1116_v48 = vpop.permute.xlu0 %1115 }
 0x2d7   :  { %v1118_v11 = vsel %vm671_vm0, %v1116_v48, 0.0 }
 0x2da   :  { %v1266_v12 = vpop.permute.xlu0 %1265 }
 0x2db   :  { %753 = vadd.xlane.f32.xlu1 %v752_v20  ;;  %v1268_v32 = vsel %vm671_vm0, %v1266_v12, 0.0 }
 0x2de   :  { %v1341_v60 = vpop.permute.xlu0 %1340 }
 0x2df   :  { %873 = vadd.xlane.f32.xlu1 %v872_v2 }
 0x2e3   :  { %1103 = vadd.xlane.f32.xlu1 %v1102_v4 }
 0x2e6   :  { %v689_v6 = vpop.xlane.xlu1 %688 }
 0x2e7   :  { %v690_v9 = vadd.f32 %v2574_v40, %v689_v6  ;;  %1237 = vadd.xlane.f32.xlu1 %v1236_v21 }
 0x2e9   :  { %v698_v14 = vmax.f32 %v2513_v24, %v690_v9  ;;  %v1260_v24 = vsel %vm671_vm0, %v2565_v56, 0.0  ;;  %v1343_v56 = vsel %vm671_vm0, %v1341_v60, 0.0 }
 0x2ea   :  { %v809_v15 = vpop.xlane.xlu1 %808 }
 0x2eb   :  { %v810_v22 = vadd.f32 %v2574_v40, %v809_v15  ;;  %1253 = vadd.xlane.f32.xlu1 %v1252_v10 }
 0x2ed   :  { %v818_v31 = vmax.f32 %v2419_v0, %v810_v22 }
 0x2ee   :  { %v2680_v43 = vpop.xlane.xlu1 %1012 }
 0x2ef   :  { %1111 = vadd.xlane.f32.xlu1 %v1110_v58 }
 0x2f2   :  { %v1309_v62 = vpop.permute.xlu1 %1308 }
 0x2f3   :  { %1261 = vadd.xlane.f32.xlu1 %v1260_v24  ;;  %v1311_v3 = vsel %vm671_vm0, %v1309_v62, 0.0 }
 0x2f4   :  { %1312 = vadd.xlane.f32.xlu0 %v1311_v3 }
 0x2f6   :  { %v1325_v8 = vpop.permute.xlu1 %1324 }
 0x2f7   :  { %1320 = vadd.xlane.f32.xlu1 %v1319_v51  ;;  %v1327_v0 = vsel %vm671_vm0, %v1325_v8, 0.0  ;;  %v915_v51 = vadd.f32 %v2673_v13, %v2350_v26 }
 0x2f8   :  { %1328 = vadd.xlane.f32.xlu0 %v1327_v0 }
 0x2fb   :  { %1119 = vadd.xlane.f32.xlu1 %v1118_v11 }
 0x2ff   :  { %1269 = vadd.xlane.f32.xlu1 %v1268_v32 }
 0x303   :  { %1344 = vadd.xlane.f32.xlu1 %v1343_v56  ;;  %v925_v56 = vadd.f32 %v2402_v27, %v2683_v29 }
 0x30f   :  { %v694_v50 = vpop.xlane.xlu0 %693 }
 0x310   :  { %v695_v52 = vadd.f32 %v2696_v49, %v694_v50 }
 0x312   :  { %v699_v57 = vmax.f32 %v698_v14, %v695_v52 }
 0x313   :  { %v814_v17 = vpop.xlane.xlu0 %813 }
 0x314   :  { %v700_v38 = vsub.f32 %v2361_v34, %v699_v57  ;;  %v703_v33 = vsub.f32 %v2364_v35, %v699_v57  ;;  %v706_v36 = vsub.f32 %v2506_v44, %v699_v57  ;;  %v709_v30 = vsub.f32 %v690_v9, %v699_v57 }
 0x315   :  { %v815_v53 = vadd.f32 %v2696_v49, %v814_v17  ;;  %v712_v2 = vsub.f32 %v695_v52, %v699_v57 }
 0x316   :  { %v701_v7 = vmul.f32 1.442695, %v700_v38  ;;  %v704_v18 = vmul.f32 1.442695, %v703_v33  ;;  %v707_v20 = vmul.f32 1.442695, %v706_v36 }
 0x317   :  { %v819_v4 = vmax.f32 %v818_v31, %v815_v53  ;;  %v710_v5 = vmul.f32 1.442695, %v709_v30  ;;  %v713_v44 = vmul.f32 1.442695, %v712_v2  ;;  %v934_v17 = vpop.xlane.xlu0 %933 }
 0x318   :  { %1853 = vpow2.f32 %v701_v7 }
 0x319   :  { %1855 = vpow2.f32 %v704_v18  ;;  %v820_v6 = vsub.f32 %v2407_v59, %v819_v4  ;;  %v823_v21 = vsub.f32 %v2410_v61, %v819_v4  ;;  %v826_v34 = vsub.f32 %v2416_v63, %v819_v4 }
 0x31a   :  { %v829_v35 = vsub.f32 %v810_v22, %v819_v4  ;;  %1857 = vpow2.f32 %v707_v20  ;;  %v832_v10 = vsub.f32 %v815_v53, %v819_v4 }
 0x31b   :  { %v821_v9 = vmul.f32 1.442695, %v820_v6  ;;  %v824_v14 = vmul.f32 1.442695, %v823_v21  ;;  %1859 = vpow2.f32 %v710_v5  ;;  %v827_v15 = vmul.f32 1.442695, %v826_v34 }
 0x31c   :  { %v830_v31 = vmul.f32 1.442695, %v829_v35  ;;  %v833_v58 = vmul.f32 1.442695, %v832_v10 }
 0x31d   :  { %1861 = vpow2.f32 %v821_v9 }
 0x31e   :  { %1863 = vpow2.f32 %v824_v14 }
 0x31f   :  { %1865 = vpow2.f32 %v713_v44 }
 0x320   :  { %1867 = vpow2.f32 %v827_v15 }
 0x321   :  { %1869 = vpow2.f32 %v830_v31 }
 0x322   :  { %v1854_v62 = vpop.eup %1853  ;;  %1871 = vpow2.f32 %v833_v58 }
 0x323   :  { %v1856_v59 = vpop.eup %1855 }
 0x324   :  { %v715_v61 = vadd.f32 %v1856_v59, %v1854_v62  ;;  %v1858_v63 = vpop.eup %1857 }
 0x325   :  { %v1860_v22 = vpop.eup %1859 }
 0x326   :  { %v716_v24 = vadd.f32 %v1858_v63, %v715_v61 }
 0x327   :  { %v1862_v3 = vpop.eup %1861  ;;  %v919_v48 = vpop.xlane.xlu1 %918 }
 0x328   :  { %v1864_v8 = vpop.eup %1863  ;;  %v717_v0 = vadd.f32 %v1860_v22, %v716_v24  ;;  %v920_v11 = vadd.f32 %v2355_v28, %v919_v48  ;;  %v935_v28 = vadd.f32 %v2696_v49, %v934_v17 }
 0x329   :  { %v1866_v12 = vpop.eup %1865  ;;  %v835_v32 = vadd.f32 %v1864_v8, %v1862_v3 }
 0x32a   :  { %v1868_v60 = vpop.eup %1867  ;;  %v718_v50 = vadd.f32 %v1866_v12, %v717_v0  ;;  %v936_v52 = vmax.f32 %v915_v51, %v920_v11 }
 0x32b   :  { %v836_v57 = vadd.f32 %v1868_v60, %v835_v32  ;;  %v929_v38 = vpop.xlane.xlu1 %928  ;;  %v1870_v33 = vpop.eup %1869 }
 0x32c   :  { %1873 = vrcp.f32 %v718_v50  ;;  %v930_v36 = vadd.f32 %v2574_v40, %v929_v38  ;;  %v937_v30 = vmax.f32 %v936_v52, %v925_v56  ;;  %v1872_v13 = vpop.eup %1871 }
 0x32d   :  { %v837_v26 = vadd.f32 %v1870_v33, %v836_v57 }
 0x32e   :  { %v938_v53 = vmax.f32 %v937_v30, %v930_v36 }
 0x32f   :  { %v838_v7 = vadd.f32 %v1872_v13, %v837_v26  ;;  %v1041_v18 = vpop.permute.xlu1 %1040 }
 0x330   :  { %v939_v20 = vmax.f32 %v938_v53, %v935_v28  ;;  %v1043_v29 = vsel %vm671_vm0, %v1041_v18, 0.0 }
 0x331   :  { %1875 = vrcp.f32 %v838_v7  ;;  %1044 = vadd.xlane.f32.xlu0 %v1043_v29 }
 0x332   :  { %v940_v2 = vsub.f32 %v915_v51, %v939_v20  ;;  %v943_v4 = vsub.f32 %v920_v11, %v939_v20  ;;  %v946_v5 = vsub.f32 %v925_v56, %v939_v20  ;;  %v949_v6 = vsub.f32 %v930_v36, %v939_v20 }
 0x333   :  { %v1191_v21 = vpop.permute.xlu1 %1190  ;;  %v952_v44 = vsub.f32 %v935_v28, %v939_v20 }
 0x334   :  { %v941_v34 = vmul.f32 1.442695, %v940_v2  ;;  %v944_v35 = vmul.f32 1.442695, %v943_v4  ;;  %v947_v9 = vmul.f32 1.442695, %v946_v5 }
 0x335   :  { %v1193_v14 = vsel %vm671_vm0, %v1191_v21, 0.0  ;;  %v950_v31 = vmul.f32 1.442695, %v949_v6  ;;  %v953_v61 = vmul.f32 1.442695, %v952_v44 }
 0x336   :  { %v1874_v15 = vpop.eup %1873  ;;  %1877 = vpow2.f32 %v941_v34  ;;  %1194 = vadd.xlane.f32.xlu0 %v1193_v14 }
 0x337   :  { %v720_v10 = vmul.f32 0.2, %v1874_v15  ;;  %1879 = vpow2.f32 %v944_v35  ;;  %v1333_v58 = vpop.permute.xlu1 %1332 }
 0x338   :  { %v1335_v24 = vsel %vm671_vm0, %v1333_v58, 0.0  ;;  %1881 = vpow2.f32 %v947_v9 }
 0x339   :  { %v2716_v48 = vmul.f32 %v1856_v59, %v720_v10  ;;  %v2718_v51 = vmul.f32 %v1854_v62, %v720_v10  ;;  %v2720_v0 = vmul.f32 %v1858_v63, %v720_v10  ;;  %v2722_v11 = vmul.f32 %v1860_v22, %v720_v10 }
 0x33a   :  { %1336 = vadd.xlane.f32.xlu0 %v1335_v24  ;;  %v2724_v32 = vmul.f32 %v1866_v12, %v720_v10  ;;  %1883 = vpow2.f32 %v950_v31 }
 0x33b   :  { %v1876_v56 = vpop.eup %1875  ;;  %1885 = vpow2.f32 %v953_v61 }
 0x33c   :  { %v840_v50 = vmul.f32 0.2, %v1876_v56 }
 0x33e   :  { %v2726_v52 = vmul.f32 %v1864_v8, %v840_v50  ;;  %v2728_v57 = vmul.f32 %v1862_v3, %v840_v50  ;;  %v2730_v17 = vmul.f32 %v1868_v60, %v840_v50  ;;  %v2732_v59 = vmul.f32 %v1870_v33, %v840_v50 }
 0x33f   :  { %v2734_v62 = vmul.f32 %v1872_v13, %v840_v50  ;;  %v2764_v50 = vpop.xlane.xlu0 %1087 }
 0x340   :  { %v1878_v63 = vpop.eup %1877 }
 0x341   :  { %v1880_v38 = vpop.eup %1879 }
 0x342   :  { %v955_v22 = vadd.f32 %v1880_v38, %v1878_v63  ;;  %v1882_v36 = vpop.eup %1881 }
 0x344   :  { %v956_v12 = vadd.f32 %v1882_v36, %v955_v22  ;;  %v1884_v30 = vpop.eup %1883 }
 0x345   :  { %v1886_v28 = vpop.eup %1885 }
 0x346   :  { %v957_v26 = vadd.f32 %v1884_v30, %v956_v12 }
 0x348   :  { %v958_v53 = vadd.f32 %v1886_v28, %v957_v26 }
 0x34a   :  { %1887 = vrcp.f32 %v958_v53  ;;  %v2768_v53 = vpop.xlane.xlu0 %1020 }
 0x354   :  { %v1888_v8 = vpop.eup %1887 }
 0x355   :  { %v960_v7 = vmul.f32 0.2, %v1888_v8 }
 0x357   :  { %v2736_v3 = vmul.f32 %v1880_v38, %v960_v7  ;;  %v2738_v60 = vmul.f32 %v1878_v63, %v960_v7  ;;  %v2740_v33 = vmul.f32 %v1882_v36, %v960_v7  ;;  %v2742_v13 = vmul.f32 %v1884_v30, %v960_v7 }
 0x358   :  { %v2744_v18 = vmul.f32 %v1886_v28, %v960_v7 }
 0x368   :  { %v754_v20 = vpop.xlane.xlu1 %753 }
 0x369   :  { %v755_v29 = vadd.f32 %v2696_v49, %v754_v20 }
 0x36b   :  { %v759_v2 = vmax.f32 %v758_v19, %v755_v29 }
 0x36c   :  { %v874_v4 = vpop.xlane.xlu1 %873 }
 0x36d   :  { %v760_v5 = vsub.f32 %v2370_v41, %v759_v2  ;;  %v763_v6 = vsub.f32 %v2373_v42, %v759_v2  ;;  %v766_v21 = vsub.f32 %v2517_v46, %v759_v2  ;;  %v769_v34 = vsub.f32 %v2582_v25, %v759_v2 }
 0x36e   :  { %v875_v35 = vadd.f32 %v2696_v49, %v874_v4  ;;  %v772_v15 = vsub.f32 %v755_v29, %v759_v2 }
 0x36f   :  { %v761_v44 = vmul.f32 1.442695, %v760_v5  ;;  %v764_v9 = vmul.f32 1.442695, %v763_v6  ;;  %v767_v14 = vmul.f32 1.442695, %v766_v21 }
 0x370   :  { %v879_v47 = vmax.f32 %v878_v55, %v875_v35  ;;  %v770_v19 = vmul.f32 1.442695, %v769_v34  ;;  %v773_v10 = vmul.f32 1.442695, %v772_v15  ;;  %v2762_v55 = vpop.f32.mrb[0].mxu1  ;;  %v2770_v2 = vpop.xlane.xlu1 %1103 }
 0x371   :  { %1889 = vpow2.f32 %v761_v44 }
 0x372   :  { %1891 = vpow2.f32 %v764_v9  ;;  %v880_v41 = vsub.f32 %v2613_v16, %v879_v47  ;;  %v883_v42 = vsub.f32 %v2610_v54, %v879_v47  ;;  %v886_v46 = vsub.f32 %v2621_v37, %v879_v47  ;;  %v1695_v54 = vpop.f32.mrb[1].mxu1 }
 0x373   :  { %v889_v25 = vsub.f32 %v2625_v39, %v879_v47  ;;  %1893 = vpow2.f32 %v767_v14  ;;  %v892_v24 = vsub.f32 %v875_v35, %v879_v47  ;;  %v326_v56 = vpop.f32.mrb[2].mxu1  ;;  %v1096_v14 = vpop.xlane.xlu0 %1095 }
 0x374   :  { %v881_v31 = vmul.f32 1.442695, %v880_v41  ;;  %v884_v58 = vmul.f32 1.442695, %v883_v42  ;;  %1895 = vpow2.f32 %v770_v19  ;;  %v887_v61 = vmul.f32 1.442695, %v886_v46  ;;  %v2772_v47 = vpop.xlane.xlu1 %1237 }
 0x375   :  { %v890_v45 = vmul.f32 1.442695, %v889_v25  ;;  %v893_v16 = vmul.f32 1.442695, %v892_v24  ;;  %v1696_v39 = vpop.f32.mrb[3].mxu1 }
 0x376   :  { %1897 = vpow2.f32 %v881_v31  ;;  %v2766_v26 = vpop.f32.mrb[4].mxu1 }
 0x377   :  { %1899 = vpow2.f32 %v884_v58  ;;  %v1715_v7 = vpop.f32.mrb[5].mxu1  ;;  %v2774_v19 = vpop.xlane.xlu0 %1162 }
 0x378   :  { %1901 = vpow2.f32 %v773_v10  ;;  %v409_v4 = vpop.f32.mrb[6].mxu1  ;;  %v2776_v41 = vpop.xlane.xlu1 %1253 }
 0x379   :  { %1903 = vpow2.f32 %v887_v61  ;;  %v1716_v21 = vpop.f32.mrb[7].mxu1 }
 0x37a   :  { %1905 = vpow2.f32 %v890_v45 }
 0x37b   :  { %v1890_v37 = vpop.eup %1889  ;;  %1907 = vpow2.f32 %v893_v16  ;;  %v2778_v25 = vpop.xlane.xlu0 %1170 }
 0x37c   :  { %v1892_v63 = vpop.eup %1891  ;;  %v1112_v58 = vpop.xlane.xlu1 %1111 }
 0x37d   :  { %v775_v38 = vadd.f32 %v1892_v63, %v1890_v37  ;;  %v1894_v22 = vpop.eup %1893 }
 0x37e   :  { %v1896_v36 = vpop.eup %1895 }
 0x37f   :  { %v776_v12 = vadd.f32 %v1894_v22, %v775_v38  ;;  %v2784_v7 = vpop.xlane.xlu0 %1028 }
 0x380   :  { %v1898_v30 = vpop.eup %1897 }
 0x381   :  { %v1900_v28 = vpop.eup %1899  ;;  %v777_v8 = vadd.f32 %v1896_v36, %v776_v12 }
 0x382   :  { %v1902_v20 = vpop.eup %1901  ;;  %v895_v29 = vadd.f32 %v1900_v28, %v1898_v30 }
 0x383   :  { %v1904_v5 = vpop.eup %1903  ;;  %v778_v6 = vadd.f32 %v1902_v20, %v777_v8 }
 0x384   :  { %v896_v34 = vadd.f32 %v1904_v5, %v895_v29  ;;  %v1906_v35 = vpop.eup %1905 }
 0x385   :  { %1909 = vrcp.f32 %v778_v6  ;;  %v1908_v9 = vpop.eup %1907  ;;  %v2786_v6 = vpop.xlane.xlu1 %1261 }
 0x386   :  { %v897_v44 = vadd.f32 %v1906_v35, %v896_v34  ;;  %v2797_v34 = vpop.xlane.xlu0 %1178 }
 0x388   :  { %v898_v15 = vadd.f32 %v1908_v9, %v897_v44  ;;  %v2803_v44 = vpop.f32.mrb[8].mxu1 }
 0x38a   :  { %1911 = vrcp.f32 %v898_v15  ;;  %v1246_v15 = vpop.xlane.xlu0 %1245 }
 0x38f   :  { %v1910_v42 = vpop.eup %1909 }
 0x390   :  { %v780_v46 = vmul.f32 0.2, %v1910_v42  ;;  %v1105_v42 = vadd.f32 %v2402_v27, %v2770_v2  ;;  %v1847_v2 = vld [vmem:[#allocation5 + $0x10] sm:$0xff]  }
 0x392   :  { %v783_v10 = vmul.f32 %v1892_v63, %v780_v46  ;;  %v781_v45 = vmul.f32 %v1890_v37, %v780_v46  ;;  %v785_v16 = vmul.f32 %v1894_v22, %v780_v46  ;;  %v787_v29 = vmul.f32 %v1896_v36, %v780_v46 }
 0x393   :  { %v789_v4 = vmul.f32 %v1902_v20, %v780_v46 }
 0x394   :  { %v1912_v31 = vpop.eup %1911  ;;  %v784_v24 = vadd.f32 %v783_v10, %v2716_v48  ;;  %v782_v12 = vadd.f32 %v781_v45, %v2718_v51  ;;  %v786_v8 = vadd.f32 %v785_v16, %v2720_v0  ;;  %v788_v22 = vadd.f32 %v787_v29, %v2722_v11 }
 0x395   :  { %v900_v61 = vmul.f32 0.2, %v1912_v31  ;;  %v1846_v31 = vld [vmem:[#allocation5 + $0x8] sm:$0xff]  }
 0x396   :  { %v844_v38 = vadd.f32 %v2726_v52, %v784_v24  ;;  %v842_v48 = vadd.f32 %v2728_v57, %v782_v12  ;;  %v846_v37 = vadd.f32 %v2730_v17, %v786_v8  ;;  %v790_v52 = vadd.f32 %v789_v4, %v2724_v32  ;;  %v1037_v12 = vpop.xlane.xlu0 %1036 }
 0x397   :  { %v903_v54 = vmul.f32 %v1900_v28, %v900_v61  ;;  %v901_v56 = vmul.f32 %v1898_v30, %v900_v61  ;;  %v905_v39 = vmul.f32 %v1904_v5, %v900_v61  ;;  %v907_v63 = vmul.f32 %v1906_v35, %v900_v61  ;;  %v2799_v35 = vpop.xlane.xlu1 %1320 }
 0x398   :  { %v909_v30 = vmul.f32 %v1908_v9, %v900_v61  ;;  %v848_v36 = vadd.f32 %v2732_v59, %v788_v22  ;;  %v850_v20 = vadd.f32 %v2734_v62, %v790_v52  ;;  %v1845_v59 = vld [vmem:[#allocation5] sm:$0xff]   ;;  %v2808_v62 = vld [vmem:[%s2960_s1 + $0x8] sm:$0xff]  ;;  %v1113_v24 = vadd.f32 %v2574_v40, %v1112_v58 }
 0x399   :  { %v904_v21 = vadd.f32 %v903_v54, %v844_v38  ;;  %v902_v0 = vadd.f32 %v901_v56, %v842_v48  ;;  %v906_v28 = vadd.f32 %v905_v39, %v846_v37  ;;  %1790 = vmatpush3.bf16.msra.mxu1 %v1845_v59  ;;  %v1247_v4 = vadd.f32 %v2808_v62, %v1246_v15 }
 0x39a   :  { %v908_v17 = vadd.f32 %v907_v63, %v848_v36  ;;  %v910_v11 = vadd.f32 %v909_v30, %v850_v20  ;;  %1791 = vmatprep.subr.bf16.mxu1 %v2056_v1  ;;  %v1187_v22 = vpop.xlane.xlu0 %1186  ;;  %v1848_v30 = vld [vmem:[#allocation5 + $0x18] sm:$0xff]   ;;  %v2852_v15 = vadd.f32 %v2808_v62, %v2778_v25 }
 0x39b   :  { %v964_v51 = vadd.f32 %v2736_v3, %v904_v21  ;;  %v962_v5 = vadd.f32 %v2738_v60, %v902_v0  ;;  %v966_v57 = vadd.f32 %v2740_v33, %v906_v28  ;;  %v1097_v60 = vadd.f32 %v2808_v62, %v1096_v14  ;;  %v1735_v33 = vpop.f32.mrb[9].mxu1  ;;  %v1120_v14 = vpop.xlane.xlu1 %1119  ;;  %v1975_v21 = vld [vmem:[%s2960_s1 + $0x10] sm:$0xff] }
 0x39c   :  { %v968_v32 = vadd.f32 %v2742_v13, %v908_v17  ;;  %v970_v3 = vadd.f32 %v2744_v18, %v910_v11  ;;  %v492_v9 = vpop.f32.mrb[10].mxu1  ;;  %v2814_v13 = vld [vmem:[%s2960_s1] sm:$0xff]  ;;  %v1255_v48 = vadd.f32 %v1975_v21, %v2776_v41  ;;  %v1022_v11 = vadd.f32 %v2808_v62, %v2768_v53 }
 0x39d   :  { %980 = vperm.xlu0 %1812, %v964_v51   ;;  %973 = vperm.xlu1 %1811, %v962_v5   ;;  %v1089_v18 = vadd.f32 %v2814_v13, %v2764_v50  ;;  %v1736_v46 = vpop.f32.mrb[11].mxu1  ;;  %v1121_v50 = vadd.f32 %v2696_v49, %v1120_v14  ;;  %v1239_v8 = vadd.f32 %v2814_v13, %v2772_v47 }
 0x39e   :  { %v2821_v10 = vpop.f32.mrb[12].mxu1  ;;  %1792 = vmatpush3.bf16.msra.mxu1 %v1846_v31  ;;  %v1263_v47 = vadd.f32 %v2574_v40, %v2786_v6  ;;  %v1313_v5 = vpop.xlane.xlu0 %1312  ;;  %v1030_v59 = vadd.f32 %v1975_v21, %v2784_v7  ;;  %v1038_v53 = vadd.f32 %v2574_v40, %v1037_v12  ;;  %v2859_v31 = vadd.f32 %v1975_v21, %v2797_v34 }
 0x39f   :  { %v1122_v61 = vmax.f32 %v1089_v18, %v1097_v60  ;;  %v1755_v45 = vpop.f32.mrb[13].mxu1  ;;  %1793 = vmatprep.subr.bf16.mxu1 %v2056_v1  ;;  %v1270_v37 = vpop.xlane.xlu1 %1269  ;;  %v1272_v52 = vmax.f32 %v1239_v8, %v1247_v4  ;;  %v2870_v34 = vadd.f32 %v2814_v13, %v1313_v5 }
 0x3a0   :  { %v575_v16 = vpop.f32.mrb[14].mxu1  ;;  %v2839_v36 = vadd.f32 %v2696_v49, %v1270_v37 }
 0x3a1   :  { %987 = vperm.xlu1 %1811, %v966_v57   ;;  %v1123_v54 = vmax.f32 %v1122_v61, %v1105_v42  ;;  %v1756_v56 = vpop.f32.mrb[15].mxu1  ;;  %v1273_v0 = vmax.f32 %v1272_v52, %v1255_v48 }
 0x3a2   :  { %v2826_v27 = vpop.f32.mrb[16].mxu1  ;;  %1794 = vmatpush3.bf16.msra.mxu1 %v1847_v2  ;;  %v1329_v33 = vpop.xlane.xlu0 %1328 }
 0x3a3   :  { %v1124_v39 = vmax.f32 %v1123_v54, %v1113_v24  ;;  %v1775_v38 = vpop.f32.mrb[17].mxu1  ;;  %1795 = vmatprep.subr.bf16.mxu1 %v2056_v1  ;;  %v1274_v20 = vmax.f32 %v1273_v0, %v1263_v47  ;;  %v2876_v12 = vadd.f32 %v1975_v21, %v1329_v33 }
 0x3a4   :  { %v658_v58 = vpop.f32.mrb[18].mxu1 }
 0x3a5   :  { %994 = vperm.xlu1 %1811, %v968_v32   ;;  %v1125_v29 = vmax.f32 %v1124_v39, %v1121_v50  ;;  %v1776_v63 = vpop.f32.mrb[19].mxu1  ;;  %v2842_v41 = vmax.f32 %v1274_v20, %v2839_v36 }
 0x3a6   :  { %1796 = vmatpush3.bf16.msra.mxu1 %v1848_v30 }
 0x3a7   :  { %v1126_v51 = vsub.f32 %v1089_v18, %v1125_v29  ;;  %v1129_v28 = vsub.f32 %v1097_v60, %v1125_v29  ;;  %v1132_v32 = vsub.f32 %v1105_v42, %v1125_v29  ;;  %v1135_v6 = vsub.f32 %v1113_v24, %v1125_v29 }
 0x3a8   :  { %v1138_v60 = vsub.f32 %v1121_v50, %v1125_v29  ;;  %v1276_v9 = vsub.f32 %v1239_v8, %v2842_v41  ;;  %v1279_v14 = vsub.f32 %v1247_v4, %v2842_v41  ;;  %v2863_v24 = vadd.f32 %v2808_v62, %v2799_v35 }
 0x3a9   :  { %1001 = vperm.xlu1 %1811, %v970_v3   ;;  %v1127_v57 = vmul.f32 1.442695, %v1126_v51  ;;  %v1130_v17 = vmul.f32 1.442695, %v1129_v28  ;;  %v1014_v3 = vadd.f32 %v2814_v13, %v2680_v43  ;;  %v1133_v42 = vmul.f32 1.442695, %v1132_v32  ;;  %v1345_v32 = vpop.xlane.xlu1 %1344 }
 0x3aa   :  { %v1136_v46 = vmul.f32 1.442695, %v1135_v6  ;;  %v1164_v43 = vadd.f32 %v2814_v13, %v2774_v19  ;;  %v1139_v61 = vmul.f32 1.442695, %v1138_v60  ;;  %v1277_v25 = vmul.f32 1.442695, %v1276_v9 }
 0x3ab   :  { %1913 = vpow2.f32 %v1127_v57  ;;  %v1047_v18 = vmax.f32 %v1014_v3, %v1022_v11  ;;  %v1282_v45 = vsub.f32 %v1255_v48, %v2842_v41  ;;  %v1188_v19 = vadd.f32 %v2574_v40, %v1187_v22 }
 0x3ac   :  { %1915 = vpow2.f32 %v1130_v17  ;;  %v1197_v54 = vmax.f32 %v1164_v43, %v2852_v15  ;;  %v1280_v2 = vmul.f32 1.442695, %v1279_v14  ;;  %v1285_v62 = vsub.f32 %v1263_v47, %v2842_v41 }
 0x3ad   :  { %v1048_v7 = vmax.f32 %v1047_v18, %v1030_v59  ;;  %1917 = vpow2.f32 %v1133_v42  ;;  %v1347_v38 = vmax.f32 %v2870_v34, %v2863_v24  ;;  %v1283_v8 = vmul.f32 1.442695, %v1282_v45 }
 0x3ae   :  { %1919 = vpow2.f32 %v1136_v46  ;;  %v1198_v35 = vmax.f32 %v1197_v54, %v2859_v31  ;;  %v1286_v47 = vmul.f32 1.442695, %v1285_v62  ;;  %v1288_v57 = vsub.f32 %v2839_v36, %v2842_v41 }
 0x3af   :  { %v1049_v50 = vmax.f32 %v1048_v7, %v1038_v53  ;;  %1921 = vpow2.f32 %v1139_v61  ;;  %v1348_v0 = vmax.f32 %v1347_v38, %v2876_v12  ;;  %v1346_v14 = vadd.f32 %v2696_v49, %v1345_v32 }
 0x3b0   :  { %1923 = vpow2.f32 %v1277_v25  ;;  %v1199_v22 = vmax.f32 %v1198_v35, %v1188_v19  ;;  %v1289_v61 = vmul.f32 1.442695, %v1288_v57 }
 0x3b1   :  { %1925 = vpow2.f32 %v1280_v2 }
 0x3b2   :  { %1927 = vpow2.f32 %v1283_v8 }
 0x3b5   :  { %v2878_v58 = vpop.eup %1913 }
 0x3b6   :  { %v2880_v37 = vpop.eup %1915 }
 0x3b7   :  { %v1141_v5 = vadd.f32 %v2880_v37, %v2878_v58  ;;  %v2890_v60 = vpop.eup %1917 }
 0x3be   :  { %v1045_v16 = vpop.xlane.xlu0 %1044 }
 0x3bf   :  { %v1046_v56 = vadd.f32 %v2696_v49, %v1045_v16 }
 0x3c1   :  { %v1050_v39 = vmax.f32 %v1049_v50, %v1046_v56 }
 0x3c3   :  { %v1051_v29 = vsub.f32 %v1014_v3, %v1050_v39  ;;  %v1054_v13 = vsub.f32 %v1022_v11, %v1050_v39  ;;  %v1057_v63 = vsub.f32 %v1030_v59, %v1050_v39  ;;  %v1060_v4 = vsub.f32 %v1038_v53, %v1050_v39  ;;  %v1195_v48 = vpop.xlane.xlu0 %1194  ;;  %v2893_v53 = vpop.eup %1919 }
 0x3c4   :  { %v1196_v52 = vadd.f32 %v2696_v49, %v1195_v48  ;;  %v1063_v21 = vsub.f32 %v1046_v56, %v1050_v39  ;;  %v2895_v46 = vpop.eup %1921 }
 0x3c5   :  { %v1052_v30 = vmul.f32 1.442695, %v1051_v29  ;;  %v1055_v51 = vmul.f32 1.442695, %v1054_v13  ;;  %v1058_v28 = vmul.f32 1.442695, %v1057_v63  ;;  %v2898_v7 = vpop.eup %1923 }
 0x3c6   :  { %v1200_v20 = vmax.f32 %v1199_v22, %v1196_v52  ;;  %v1061_v17 = vmul.f32 1.442695, %v1060_v4  ;;  %v1064_v33 = vmul.f32 1.442695, %v1063_v21  ;;  %v2901_v45 = vpop.eup %1925 }
 0x3c7   :  { %1929 = vpow2.f32 %v1052_v30  ;;  %v1337_v11 = vpop.xlane.xlu0 %1336  ;;  %v2906_v56 = vpop.eup %1927  ;;  %v1291_v62 = vadd.f32 %v2901_v45, %v2898_v7 }
 0x3c8   :  { %1931 = vpow2.f32 %v1055_v51  ;;  %v1201_v6 = vsub.f32 %v1164_v43, %v1200_v20  ;;  %v1204_v3 = vsub.f32 %v2852_v15, %v1200_v20  ;;  %v1207_v59 = vsub.f32 %v2859_v31, %v1200_v20 }
 0x3c9   :  { %1933 = vpow2.f32 %v1286_v47  ;;  %v1210_v9 = vsub.f32 %v1188_v19, %v1200_v20  ;;  %v1338_v18 = vadd.f32 %v2574_v40, %v1337_v11  ;;  %v1213_v42 = vsub.f32 %v1196_v52, %v1200_v20 }
 0x3ca   :  { %1935 = vpow2.f32 %v1058_v28  ;;  %v1202_v36 = vmul.f32 1.442695, %v1201_v6  ;;  %v1205_v41 = vmul.f32 1.442695, %v1204_v3  ;;  %v1208_v15 = vmul.f32 1.442695, %v1207_v59 }
 0x3cb   :  { %1937 = vpow2.f32 %v1061_v17  ;;  %v1349_v43 = vmax.f32 %v1348_v0, %v1338_v18  ;;  %v1142_v31 = vadd.f32 %v2890_v60, %v1141_v5  ;;  %v1211_v40 = vmul.f32 1.442695, %v1210_v9 }
 0x3cc   :  { %1939 = vpow2.f32 %v1202_v36  ;;  %v1214_v16 = vmul.f32 1.442695, %v1213_v42  ;;  %v1292_v22 = vadd.f32 %v2906_v56, %v1291_v62 }
 0x3cd   :  { %1941 = vpow2.f32 %v1205_v41  ;;  %v1350_v25 = vmax.f32 %v1349_v43, %v1346_v14  ;;  %v1143_v19 = vadd.f32 %v2893_v53, %v1142_v31 }
 0x3ce   :  { %1943 = vpow2.f32 %v1064_v33 }
 0x3cf   :  { %1945 = vpow2.f32 %v1208_v15  ;;  %v1351_v54 = vsub.f32 %v2870_v34, %v1350_v25  ;;  %v1354_v49 = vsub.f32 %v2863_v24, %v1350_v25  ;;  %v1357_v50 = vsub.f32 %v2876_v12, %v1350_v25 }
 0x3d0   :  { %1947 = vpow2.f32 %v1289_v61  ;;  %v1360_v2 = vsub.f32 %v1338_v18, %v1350_v25  ;;  %v1363_v29 = vsub.f32 %v1346_v14, %v1350_v25  ;;  %v1144_v48 = vadd.f32 %v2895_v46, %v1143_v19 }
 0x3d1   :  { %v1930_v35 = vpop.eup %1929  ;;  %1949 = vpow2.f32 %v1211_v40  ;;  %v1352_v39 = vmul.f32 1.442695, %v1351_v54  ;;  %v1355_v38 = vmul.f32 1.442695, %v1354_v49  ;;  %v1358_v34 = vmul.f32 1.442695, %v1357_v50 }
 0x3d2   :  { %v1932_v8 = vpop.eup %1931  ;;  %1951 = vpow2.f32 %v1214_v16  ;;  %v1361_v63 = vmul.f32 1.442695, %v1360_v2  ;;  %v1364_v30 = vmul.f32 1.442695, %v1363_v29 }
 0x3d3   :  { %v2911_v24 = vpop.eup %1933  ;;  %v1066_v12 = vadd.f32 %v1932_v8, %v1930_v35  ;;  %1953 = vpow2.f32 %v1352_v39 }
 0x3d4   :  { %v1936_v13 = vpop.eup %1935  ;;  %1955 = vpow2.f32 %v1355_v38  ;;  %v1293_v5 = vadd.f32 %v2911_v24, %v1292_v22 }
 0x3d5   :  { %v1938_v4 = vpop.eup %1937  ;;  %v1067_v52 = vadd.f32 %v1936_v13, %v1066_v12  ;;  %1957 = vpow2.f32 %v1358_v34 }
 0x3d6   :  { %v1940_v47 = vpop.eup %1939  ;;  %1959 = vpow2.f32 %v1361_v63 }
 0x3d7   :  { %v1942_v51 = vpop.eup %1941  ;;  %v1068_v21 = vadd.f32 %v1938_v4, %v1067_v52  ;;  %1961 = vrcp.f32 %v1144_v48 }
 0x3d8   :  { %v1944_v0 = vpop.eup %1943  ;;  %v1216_v28 = vadd.f32 %v1942_v51, %v1940_v47  ;;  %1963 = vpow2.f32 %v1364_v30 }
 0x3d9   :  { %v1946_v20 = vpop.eup %1945  ;;  %v1069_v57 = vadd.f32 %v1944_v0, %v1068_v21 }
 0x3da   :  { %v2916_v17 = vpop.eup %1947  ;;  %v1217_v11 = vadd.f32 %v1946_v20, %v1216_v28 }
 0x3db   :  { %v1950_v32 = vpop.eup %1949  ;;  %1965 = vrcp.f32 %v1069_v57  ;;  %v1294_v33 = vadd.f32 %v2916_v17, %v1293_v5 }
 0x3dc   :  { %v1952_v6 = vpop.eup %1951  ;;  %v1218_v3 = vadd.f32 %v1950_v32, %v1217_v11 }
 0x3dd   :  { %v1954_v59 = vpop.eup %1953 }
 0x3de   :  { %v1956_v9 = vpop.eup %1955  ;;  %v1219_v18 = vadd.f32 %v1952_v6, %v1218_v3 }
 0x3df   :  { %v1366_v36 = vadd.f32 %v1956_v9, %v1954_v59  ;;  %v1958_v41 = vpop.eup %1957 }
 0x3e0   :  { %1967 = vrcp.f32 %v1219_v18  ;;  %v1960_v14 = vpop.eup %1959 }
 0x3e1   :  { %1969 = vrcp.f32 %v1294_v33  ;;  %v1367_v42 = vadd.f32 %v1958_v41, %v1366_v36  ;;  %v1962_v15 = vpop.eup %1961 }
 0x3e2   :  { %v1964_v31 = vpop.eup %1963  ;;  %v1146_v16 = vmul.f32 0.2, %v1962_v15 }
 0x3e3   :  { %v1368_v43 = vadd.f32 %v1960_v14, %v1367_v42 }
 0x3e4   :  { %v1149_v62 = vmul.f32 %v2880_v37, %v1146_v16  ;;  %v1147_v39 = vmul.f32 %v2878_v58, %v1146_v16  ;;  %v1151_v52 = vmul.f32 %v2890_v60, %v1146_v16  ;;  %v1153_v21 = vmul.f32 %v2893_v53, %v1146_v16 }
 0x3e5   :  { %v1966_v61 = vpop.eup %1965  ;;  %v1369_v40 = vadd.f32 %v1964_v31, %v1368_v43  ;;  %v1155_v3 = vmul.f32 %v2895_v46, %v1146_v16  ;;  %v1850_v16 = vld [vmem:[#allocation5 + $0x28] sm:$0xff]  }
 0x3e6   :  { %v1071_v25 = vmul.f32 0.2, %v1966_v61 }
 0x3e7   :  { %1971 = vrcp.f32 %v1369_v40 }
 0x3e8   :  { %v1074_v49 = vmul.f32 %v1932_v8, %v1071_v25  ;;  %v1072_v50 = vmul.f32 %v1930_v35, %v1071_v25  ;;  %v1076_v29 = vmul.f32 %v1936_v13, %v1071_v25  ;;  %v1078_v12 = vmul.f32 %v1938_v4, %v1071_v25 }
 0x3e9   :  { %v1080_v11 = vmul.f32 %v1944_v0, %v1071_v25 }
 0x3ea   :  { %v1968_v54 = vpop.eup %1967  ;;  %v1150_v48 = vadd.f32 %v1149_v62, %v1074_v49  ;;  %v1148_v22 = vadd.f32 %v1147_v39, %v1072_v50  ;;  %v1152_v57 = vadd.f32 %v1151_v52, %v1076_v29  ;;  %v1154_v37 = vadd.f32 %v1153_v21, %v1078_v12 }
 0x3eb   :  { %v1970_v19 = vpop.eup %1969  ;;  %v1221_v2 = vmul.f32 0.2, %v1968_v54  ;;  %v1156_v42 = vadd.f32 %v1155_v3, %v1080_v11 }
 0x3ec   :  { %v1296_v63 = vmul.f32 0.2, %v1970_v19 }
 0x3ed   :  { %v1224_v38 = vmul.f32 %v1942_v51, %v1221_v2  ;;  %v1222_v34 = vmul.f32 %v1940_v47, %v1221_v2  ;;  %v1226_v30 = vmul.f32 %v1946_v20, %v1221_v2  ;;  %v1228_v8 = vmul.f32 %v1950_v32, %v1221_v2 }
 0x3ee   :  { %v1299_v58 = vmul.f32 %v2901_v45, %v1296_v63  ;;  %v1297_v13 = vmul.f32 %v2898_v7, %v1296_v63  ;;  %v1230_v60 = vmul.f32 %v1952_v6, %v1221_v2  ;;  %v1301_v18 = vmul.f32 %v2906_v56, %v1296_v63 }
 0x3ef   :  { %v1225_v35 = vadd.f32 %v1224_v38, %v1150_v48  ;;  %v1223_v28 = vadd.f32 %v1222_v34, %v1148_v22  ;;  %v1227_v4 = vadd.f32 %v1226_v30, %v1152_v57  ;;  %v1229_v51 = vadd.f32 %v1228_v8, %v1154_v37 }
 0x3f0   :  { %v1303_v36 = vmul.f32 %v2911_v24, %v1296_v63  ;;  %v1231_v40 = vadd.f32 %v1230_v60, %v1156_v42  ;;  %v1849_v24 = vld [vmem:[#allocation5 + $0x20] sm:$0xff]  }
 0x3f1   :  { %v1972_v5 = vpop.eup %1971  ;;  %v1300_v20 = vadd.f32 %v1299_v58, %v1225_v35  ;;  %v1298_v53 = vadd.f32 %v1297_v13, %v1223_v28  ;;  %v1302_v7 = vadd.f32 %v1301_v18, %v1227_v4  ;;  %1778 = vmatpush3.bf16.msra.mxu0 %v1849_v24 }
 0x3f2   :  { %v1371_v47 = vmul.f32 0.2, %v1972_v5  ;;  %v1304_v61 = vadd.f32 %v1303_v36, %v1229_v51  ;;  %1779 = vmatprep.subr.bf16.mxu0 %v2056_v1 }
 0x3f4   :  { %v1374_v33 = vmul.f32 %v1956_v9, %v1371_v47  ;;  %v1372_v32 = vmul.f32 %v1954_v59, %v1371_v47  ;;  %v1376_v45 = vmul.f32 %v1958_v41, %v1371_v47  ;;  %v1378_v43 = vmul.f32 %v1960_v14, %v1371_v47  ;;  %v1851_v41 = vld [vmem:[#allocation5 + $0x30] sm:$0xff]   ;;  %v1852_v14 = vld [vmem:[#allocation5 + $0x38] sm:$0xff]  }
 0x3f5   :  { %v1305_v9 = vmul.f32 %v2916_v17, %v1296_v63  ;;  %v1380_v25 = vmul.f32 %v1964_v31, %v1371_v47  ;;  %1780 = vmatpush3.bf16.msra.mxu0 %v1850_v16  ;;  %v115_v17 = vsub.s32 2, %v2269_v23  ;;  %v1976_v31 = vld [vmem:[%s2962_s3] sm:$0x7] }
 0x3f6   :  { %v1375_v0 = vadd.f32 %v1374_v33, %v1300_v20  ;;  %v1373_v15 = vadd.f32 %v1372_v32, %v1298_v53  ;;  %v1377_v46 = vadd.f32 %v1376_v45, %v1302_v7  ;;  %v1379_v6 = vadd.f32 %v1378_v43, %v1304_v61  ;;  %1781 = vmatprep.subr.bf16.mxu0 %v2056_v1  ;;  %v1621_v32 = vld [vmem:[%s2964_s5] ss:$0 sm:$0xff] }
 0x3f7   :  { %v1306_v56 = vadd.f32 %v1305_v9, %v1231_v40  ;;  %v116_v54 = vrot.slane %v1976_v31, %v115_v17 }
 0x3f8   :  { %1391 = vperm.xlu1 %1811, %v1375_v0   ;;  %1384 = vperm.xlu0 %1812, %v1373_v15  }
 0x3f9   :  { %v1381_v59 = vadd.f32 %v1380_v25, %v1306_v56  ;;  %1782 = vmatpush3.bf16.msra.mxu0 %v1851_v41  ;;  %v407_v50 = vadd.f32 %v2766_v26, %v116_v54  ;;  %v324_v2 = vadd.f32 %v2762_v55, %v116_v54  ;;  %v490_v62 = vadd.f32 %v2803_v44, %v116_v54 }
 0x3fa   :  { %1783 = vmatprep.subr.bf16.mxu0 %v2056_v1  ;;  %v573_v1 = vadd.f32 %v2821_v10, %v116_v54  ;;  %v656_v48 = vadd.f32 %v2826_v27, %v116_v54 }
 0x3fc   :  { %1398 = vperm.xlu1 %1811, %v1377_v46   ;;  %1405 = vperm.xlu0 %1812, %v1379_v6  }
 0x3fd   :  { %1784 = vmatpush3.bf16.msra.mxu0 %v1852_v14 }
 0x400   :  { %1412 = vperm.xlu1 %1811, %v1381_v59  }
 0x41c   :  { %v974_v49 = vpop.permute.xlu1 %973  ;;  %v981_v19 = vpop.permute.xlu0 %980 }
 0x41d   :  { %v976_v38 = vmul.f32 %v974_v49, %v324_v2  ;;  %v983_v34 = vmul.f32 %v981_v19, %v407_v50 }
 0x41f   :  { %v984_v12 = vadd.f32 %v983_v34, %v976_v38 }
 0x420   :  { %v988_v39 = vpop.permute.xlu1 %987 }
 0x421   :  { %v990_v29 = vmul.f32 %v988_v39, %v490_v62 }
 0x423   :  { %v991_v22 = vadd.f32 %v990_v29, %v984_v12 }
 0x424   :  { %v995_v23 = vpop.permute.xlu1 %994 }
 0x425   :  { %v997_v63 = vmul.f32 %v995_v23, %v573_v1 }
 0x427   :  { %v998_v30 = vadd.f32 %v997_v63, %v991_v22 }
 0x428   :  { %v1002_v52 = vpop.permute.xlu1 %1001 }
 0x429   :  { %v1004_v26 = vmul.f32 %v1002_v52, %v656_v48 }
 0x42b   :  { %v1005_v21 = vadd.f32 %v1004_v26, %v998_v30 }
 0x42d   :  { %v1006_v8 = vpack.c.bf16 %v1005_v21, %v1005_v21 }
 0x42f   :  { %1798 = vmatmul.mubr.msk.bf16.vlgmr.msra.gmra.mrb[20].mxu1 %vm671_vm0, %v1006_v8 }
 0x477   :  { %v1392_v55 = vpop.permute.xlu1 %1391  ;;  %v1385_v44 = vpop.permute.xlu0 %1384 }
 0x478   :  { %v1394_v35 = vmul.f32 %v1392_v55, %v407_v50  ;;  %v1387_v28 = vmul.f32 %v1385_v44, %v324_v2 }
 0x47a   :  { %v1395_v57 = vadd.f32 %v1394_v35, %v1387_v28 }
 0x47b   :  { %v1399_v5 = vpop.permute.xlu1 %1398  ;;  %v1406_v10 = vpop.permute.xlu0 %1405 }
 0x47c   :  { %v1401_v37 = vmul.f32 %v1399_v5, %v490_v62  ;;  %v1408_v58 = vmul.f32 %v1406_v10, %v573_v1 }
 0x47e   :  { %v1402_v11 = vadd.f32 %v1401_v37, %v1395_v57 }
 0x47f   :  { %v1413_v47 = vpop.permute.xlu1 %1412 }
 0x480   :  { %v1409_v27 = vadd.f32 %v1408_v58, %v1402_v11  ;;  %v1415_v13 = vmul.f32 %v1413_v47, %v656_v48 }
 0x482   :  { %v1416_v4 = vadd.f32 %v1415_v13, %v1409_v27 }
 0x484   :  { %v1417_v51 = vpack.c.bf16 %v1416_v4, %v1416_v4 }
 0x486   :  { %1419 = vrot.lane.b32.xlu0 %v1417_v51, %s2053_s2  ;;  %s2021_s2 = scalar_lea.vmem %s1570_s28, 128 }
 0x487   :  { %p2022_p2 = scmp.ne.s32.totalorder %s1570_s28, %s2021_s2  ;;  %p2027_p4 = scmp.lt.s32.totalorder %s2021_s2, %s2021_s2 }
 0x489   :  { %p2028_p5 = por %p2027_p4, %p2026_p3 }
 0x48b   :  { %p2029_p6 = pnand %p2028_p5, %p2022_p2 }
 0x4f8   :  { %v1420_v3 = vpop.permute.xlu0 %1419 }
 0x4f9   :  { %1786 = vmatmul.mubr.msk.bf16.vlgmr.msra.gmra.mrb[20].mxu0 %vm671_vm0, %v1420_v3 }
 0x502   :  { %v1549_v60 = vpop.f32.mrb[20].mxu1 }
 0x503   :  { %v1799_v20 = vpop.f32.mrb[21].mxu1 }
 0x504   :  { %v1552_v33 = vpop.f32.mrb[22].mxu1 }
 0x505   :  { %v1800_v53 = vpop.f32.mrb[23].mxu1 }
 0x5cc   :  { %v1482_v18 = vpop.f32.mrb[20].mxu0 }
 0x5cd   :  { %v1550_v36 = vadd.f32 %v1549_v60, %v1482_v18  ;;  %v1787_v42 = vpop.f32.mrb[21].mxu0 }
 0x5ce   :  { %v1485_v0 = vpop.f32.mrb[22].mxu0 }
 0x5cf   :  { %v1561_v15 = vadd.f32 %v1621_v32, %v1550_v36  ;;  %v1788_v45 = vpop.f32.mrb[23].mxu0 }
 0x5d1   :  { %1562 = vst [vmem:[#allocation7] sm:$0xff] %v1561_v15 }
 0x5d2   :  { %2032 = shalt.err (!%p2029_p6)
}
 0x5d3   :  { %s2033_s5 = scalar_lea.hbm %s2965_s6, 128 }
 0x5d4   :  { %p2034_p7 = scmp.ne.s32.totalorder %s2965_s6, %s2033_s5  ;;  %p2037_p8 = scmp.lt.u32.totalorder %s2033_s5, %s2965_s6 }
 0x5d6   :  { %p2039_p9 = pnand %p2037_p8, %p2034_p7 }
 0x5d8   :  { %2042 = shalt.err (!%p2039_p9)
}
 0x5d9   :  { %1572 = dma.vmem_to_hbm [thread:$0]  %s1570_s28, 128, %s2965_s6, [#allocation4]  }
 0x5da   :  { %2047 = dma.done.wait [#allocation4], 128  }
 0x5db   :  { %2048 = vsyncadd [#allocation4], 4294967168 }
 0x5dc   :  { %1576 = vsyncpa [#allocation3], 1 }
 0x5dd   :  { %1577 = vsyncpa [#allocation6], 1 }
 0x5de   :  { %1578 = vsyncpa [#allocation4], 1 }

</bundles_post_ra>
